<compile_context>
chip_gen: v5e
topology: v5e:2x2
jax: 0.10.0
libtpu: 0.0.40
codegen_flags: <defaults>
</compile_context>

<pallas_src>
import functools

import jax
import jax.numpy as jnp
from jax.experimental import pallas as pl
from jax.experimental.pallas import tpu as pltpu

LANE = 128
NEG_SLOPE = 0.2


def _round_up(x, m):
    return ((x + m - 1) // m) * m


def _pad2(x, rows, cols):
    out = jnp.zeros((rows, cols), x.dtype)
    return out.at[: x.shape[0], : x.shape[1]].set(x)


def _chip_defaults():
    """Returns (tm_target, tk_target, vmem_cap_bytes, prefer_even_row_tiles)."""
    try:
        kind = jax.devices()[0].device_kind.lower()
    except Exception:
        kind = ""
    if "v7" in kind:
        # 64 MiB VMEM per TensorCore -> leave headroom; 2 TCs -> even row tiles.
        return 512, 4096, 48 << 20, True
    if "v5" in kind or "v6" in kind:
        # 128 MiB VMEM -> grow tiles, raise scoped-VMEM cap.
        return 1024, 4096, 100 << 20, False
    return 512, 2048, 48 << 20, True


def _pick_tile(n_pad, target, prefer_even_count=False):
    """Largest multiple of 128 dividing n_pad, <= target (multiple of 128)."""
    t = min(_round_up(target, LANE), n_pad)
    while n_pad % t:
        t -= LANE
    t = max(t, LANE)
    if prefer_even_count and (n_pad // t) % 2 == 1:
        t2 = t - LANE
        while t2 >= LANE:
            if n_pad % t2 == 0 and (n_pad // t2) % 2 == 0:
                return t2
            t2 -= LANE
    return t


def _ngcf_layer_kernel(a_ref, ego_k_ref, ego_row_ref, wgc_ref, wbi_ref, b_ref,
                       ego_out_ref, norm_out_ref, acc_ref):
    """One NGCF propagation layer, tiled over (row tiles, N-reduction tiles)."""
    k = pl.program_id(1)

    @pl.when(k == 0)
    def _init():
        acc_ref[...] = jnp.zeros_like(acc_ref)

    # side_embeddings = A_hat @ ego : native bf16 x bf16 MXU dot, f32 acc.
    acc_ref[...] += jnp.dot(a_ref[...], ego_k_ref[...],
                            preferred_element_type=jnp.float32)

    @pl.when(k == pl.num_programs(1) - 1)
    def _finalize():
        side = acc_ref[...]                               # [tm, D_in] f32
        ego = ego_row_ref[...].astype(jnp.float32)        # [tm, D_in]
        # side@W_gc + (ego*side)@W_bi + (b_gc + b_bi)   (no concat copy)
        pre = (jnp.dot(side, wgc_ref[...], preferred_element_type=jnp.float32)
               + jnp.dot(ego * side, wbi_ref[...],
                         preferred_element_type=jnp.float32)
               + b_ref[...])
        act = jnp.maximum(pre, NEG_SLOPE * pre)           # LeakyReLU(0.2)
        ego_out_ref[...] = act.astype(ego_out_ref.dtype)  # next-layer ego, bf16
        # F.normalize(p=2, dim=1): x / max(||x||,1e-12) via rsqrt (EUP slot).
        ssq = jnp.sum(act * act, axis=-1, keepdims=True)
        norm_out_ref[...] = act * jax.lax.rsqrt(jnp.maximum(ssq, 1e-24))


def ngcf_layer(a_pad, ego, w_gc, w_bi, b_sum, *, tm, tk, vmem_cap):
    """a_pad: [Np,Np] bf16, ego: [Np,D_in] bf16, w_*: [D_in,D_out] f32,
       b_sum: [1,D_out] f32 (= b_gc + b_bi)."""
    n = a_pad.shape[0]
    d_in = ego.shape[1]
    d_out = w_gc.shape[1]
    grid = (n // tm, n // tk)

    a_bytes = jnp.dtype(a_pad.dtype).itemsize
    e_bytes = jnp.dtype(ego.dtype).itemsize
    flops = 2 * n * n * d_in + 4 * n * d_in * d_out
    bytes_accessed = (n * n * a_bytes
                      + (grid[0] + 1) * n * d_in * e_bytes
                      + n * d_out * (e_bytes + 4)
                      + 2 * d_in * d_out * 4 + d_out * 4)

    # Double-buffered tile footprint (+ f32 accumulator) with headroom,
    # clamped to the per-generation scoped-VMEM cap.
    vmem_bytes = int(1.5 * (2 * tm * tk * a_bytes          # A tile x2
                            + 2 * tk * d_in * e_bytes      # ego (reduction) x2
                            + 2 * tm * d_in * e_bytes      # ego (row) x2
                            + 2 * 2 * d_in * d_out * 4     # W_gc, W_bi x2
                            + 2 * d_out * 4                # bias x2
                            + 2 * tm * d_out * (e_bytes + 4)  # 2 outputs x2
                            + tm * d_in * 4)) + (4 << 20)  # accumulator + slack
    vmem_bytes = max(16 << 20, min(vmem_bytes, vmem_cap))

    out_shape = (
        jax.ShapeDtypeStruct((n, d_out), ego.dtype),      # ego_{k+1} (bf16)
        jax.ShapeDtypeStruct((n, d_out), jnp.float32),    # normalized embeds
    )
    return pl.pallas_call(
        _ngcf_layer_kernel,
        grid_spec=pltpu.PrefetchScalarGridSpec(
            num_scalar_prefetch=0,
            grid=grid,
            in_specs=[
                pl.BlockSpec((tm, tk), lambda i, k: (i, k)),        # A tile
                pl.BlockSpec((tk, d_in), lambda i, k: (k, 0)),      # ego (red)
                pl.BlockSpec((tm, d_in), lambda i, k: (i, 0)),      # ego (row)
                pl.BlockSpec((d_in, d_out), lambda i, k: (0, 0)),   # W_gc
                pl.BlockSpec((d_in, d_out), lambda i, k: (0, 0)),   # W_bi
                pl.BlockSpec((1, d_out), lambda i, k: (0, 0)),      # b_gc+b_bi
            ],
            out_specs=[
                pl.BlockSpec((tm, d_out), lambda i, k: (i, 0)),
                pl.BlockSpec((tm, d_out), lambda i, k: (i, 0)),
            ],
            scratch_shapes=[pltpu.VMEM((tm, d_in), jnp.float32)],
        ),
        out_shape=out_shape,
        compiler_params=pltpu.CompilerParams(
            dimension_semantics=("parallel", "arbitrary"),
            vmem_limit_bytes=int(vmem_bytes)),
        cost_estimate=pl.CostEstimate(flops=int(flops),
                                      transcendentals=int(n),
                                      bytes_accessed=int(bytes_accessed)),
    )(a_pad, ego, ego, w_gc, w_bi, b_sum)


def prepare_adjacency(a_hat, n_pad, a_dtype=jnp.bfloat16):
    """Pad + bf16-cast the normalized adjacency ONCE (hoisted out of forward)."""
    return _pad2(a_hat, n_pad, n_pad).astype(a_dtype)


def ngcf_forward(a_pad, user_emb, item_emb, weights, users, pos_items,
                 neg_items, *, n_user, tm, tk, vmem_cap,
                 ego_dtype=jnp.bfloat16):
    """Replicates NGCF.forward (drop rates = 0). a_pad is the pre-padded bf16
    adjacency from prepare_adjacency()."""
    n_real = user_emb.shape[0] + item_emb.shape[0]
    n_pad = a_pad.shape[0]

    ego = jnp.concatenate([user_emb, item_emb], axis=0)        # [N, D0] f32
    # Padded ego rows pick up LeakyReLU(bias) junk between layers; harmless
    # because A's padded rows/cols are zero and those rows are sliced off.
    ego_pad = _pad2(ego, n_pad, ego.shape[1]).astype(ego_dtype)

    all_embeddings = [ego]
    for (w_gc, b_gc, w_bi, b_bi) in weights:
        ego_pad, norm_pad = ngcf_layer(a_pad, ego_pad, w_gc, w_bi, b_gc + b_bi,
                                       tm=tm, tk=tk, vmem_cap=vmem_cap)
        all_embeddings.append(norm_pad[:n_real, :])

    all_embeddings = jnp.concatenate(all_embeddings, axis=1)   # [N, D0+sum(Dk)]
    u_g = all_embeddings[:n_user, :][users, :]
    i_g = all_embeddings[n_user:, :]
    return u_g, i_g[pos_items, :], i_g[neg_items, :]


# ----------------------------- pure-JAX reference ---------------------------

def ngcf_reference(a_hat, user_emb, item_emb, weights, users, pos_items,
                   neg_items, n_user):
    ego = jnp.concatenate([user_emb, item_emb], axis=0)
    all_emb = [ego]
    for (w_gc, b_gc, w_bi, b_bi) in weights:
        side = a_hat @ ego
        s = side @ w_gc + b_gc
        bi = (ego * side) @ w_bi + b_bi
        pre = s + bi
        ego = jnp.where(pre >= 0, pre, NEG_SLOPE * pre)
        nrm = jnp.sqrt(jnp.sum(ego * ego, axis=1, keepdims=True))
        all_emb.append(ego / jnp.maximum(nrm, 1e-12))
    all_emb = jnp.concatenate(all_emb, axis=1)
    u = all_emb[:n_user, :][users, :]
    i = all_emb[n_user:, :]
    return u, i[pos_items, :], i[neg_items, :]


# ----------------------------- example inputs -------------------------------

def xavier_uniform(key, shape):
    fan_in, fan_out = shape[0], shape[1]
    bound = (6.0 / (fan_in + fan_out)) ** 0.5
    return jax.random.uniform(key, shape, jnp.float32, -bound, bound)


def build_norm_adj(key, n_user, n_item):
    """Dense symmetric-normalized bipartite adjacency D^-1/2 A D^-1/2."""
    n = n_user + n_item
    r = (jax.random.uniform(key, (n_user, n_item)) < 0.1).astype(jnp.float32)
    a = jnp.zeros((n, n), jnp.float32)
    a = a.at[:n_user, n_user:].set(r)
    a = a.at[n_user:, :n_user].set(r.T)
    deg = jnp.sum(a, axis=1)
    d_inv_sqrt = jnp.where(deg > 0, 1.0 / jnp.sqrt(jnp.maximum(deg, 1e-12)), 0.0)
    return a * d_inv_sqrt[:, None] * d_inv_sqrt[None, :]


if __name__ == "__main__":
    n_user, n_item = 48, 80            # N = 128 nodes
    emb_size = 32
    layer_sizes = [32, 32, 32]
    batch = 8

    key = jax.random.PRNGKey(0)
    keys = jax.random.split(key, 4 + 4 * len(layer_sizes) + 3)
    kidx = 0

    a_hat = build_norm_adj(keys[kidx], n_user, n_item); kidx += 1
    user_emb = xavier_uniform(keys[kidx], (n_user, emb_size)); kidx += 1
    item_emb = xavier_uniform(keys[kidx], (n_item, emb_size)); kidx += 1

    dims = [emb_size] + layer_sizes
    weights = []
    for k in range(len(layer_sizes)):
        w_gc = xavier_uniform(keys[kidx], (dims[k], dims[k + 1])); kidx += 1
        b_gc = xavier_uniform(keys[kidx], (1, dims[k + 1])); kidx += 1
        w_bi = xavier_uniform(keys[kidx], (dims[k], dims[k + 1])); kidx += 1
        b_bi = xavier_uniform(keys[kidx], (1, dims[k + 1])); kidx += 1
        weights.append((w_gc, b_gc, w_bi, b_bi))

    users = jax.random.randint(keys[kidx], (batch,), 0, n_user); kidx += 1
    pos_items = jax.random.randint(keys[kidx], (batch,), 0, n_item); kidx += 1
    neg_items = jax.random.randint(keys[kidx], (batch,), 0, n_item); kidx += 1

    # Chip-aware tiling and one-time padded-A preparation (outside the jit).
    tm_target, tk_target, vmem_cap, prefer_even = _chip_defaults()
    n_pad = _round_up(n_user + n_item, LANE)
    tm = _pick_tile(n_pad, tm_target, prefer_even_count=prefer_even)
    tk = _pick_tile(n_pad, tk_target)
    a_pad = jax.block_until_ready(prepare_adjacency(a_hat, n_pad))

    fwd = jax.jit(functools.partial(ngcf_forward, n_user=n_user,
                                    tm=tm, tk=tk, vmem_cap=vmem_cap))
    u_g, pos_i_g, neg_i_g = fwd(a_pad, user_emb, item_emb, weights,
                                users, pos_items, neg_items)
    jax.block_until_ready((u_g, pos_i_g, neg_i_g))

    total_dim = emb_size + sum(layer_sizes)
    assert u_g.shape == (batch, total_dim)
    assert pos_i_g.shape == (batch, total_dim)
    assert neg_i_g.shape == (batch, total_dim)
    assert bool(jnp.all(jnp.isfinite(u_g)))
    assert bool(jnp.all(jnp.isfinite(pos_i_g)))
    assert bool(jnp.all(jnp.isfinite(neg_i_g)))

    # Validate against the f32 JAX reference (A and the per-layer ego carry
    # are bf16 inside the kernel, so allow a small per-layer drift).
    r_u, r_p, r_n = ngcf_reference(a_hat, user_emb, item_emb, weights,
                                   users, pos_items, neg_items, n_user)
    for got, ref in ((u_g, r_u), (pos_i_g, r_p), (neg_i_g, r_n)):
        err = float(jnp.max(jnp.abs(got - ref)))
        assert err < 5e-2, f"max abs err {err}"

    print("KERNEL_OK")
</pallas_src>

<mosaic_0001>
module attributes {stable_mosaic.version = 11 : i64} {
  func.func @_ngcf_layer_kernel(%arg0: i32, %arg1: i32, %arg2: memref<128x128xbf16, #tpu.memory_space<vmem>>, %arg3: memref<128x32xbf16, #tpu.memory_space<vmem>>, %arg4: memref<128x32xbf16, #tpu.memory_space<vmem>>, %arg5: memref<32x32xf32, #tpu.memory_space<vmem>>, %arg6: memref<32x32xf32, #tpu.memory_space<vmem>>, %arg7: memref<1x32xf32, #tpu.memory_space<vmem>>, %arg8: memref<128x32xbf16, #tpu.memory_space<vmem>>, %arg9: memref<128x32xf32, #tpu.memory_space<vmem>>, %arg10: memref<128x32xf32, #tpu.memory_space<vmem>>) attributes {dimension_semantics = [#tpu.dimension_semantics<parallel>, #tpu.dimension_semantics<arbitrary>], iteration_bounds = array<i64: 1, 1>, scalar_prefetch = 0 : i64, scratch_operands = 1 : i64, tpu.core_type = #tpu.core_type<tc>, window_params = [{transform_indices = @transform_0, window_bounds = array<i64: 128, 128>}, {transform_indices = @transform_1, window_bounds = array<i64: 128, 32>}, {transform_indices = @transform_2, window_bounds = array<i64: 128, 32>}, {pipeline_mode = #tpu.pipeline_mode<synchronous>, transform_indices = @transform_3, window_bounds = array<i64: 32, 32>}, {pipeline_mode = #tpu.pipeline_mode<synchronous>, transform_indices = @transform_4, window_bounds = array<i64: 32, 32>}, {pipeline_mode = #tpu.pipeline_mode<synchronous>, transform_indices = @transform_5, window_bounds = array<i64: 1, 32>}, {transform_indices = @transform_6, window_bounds = array<i64: 128, 32>}, {transform_indices = @transform_7, window_bounds = array<i64: 128, 32>}]} {
    %c0_i32 = arith.constant 0 : i32
    %0 = arith.cmpi eq, %arg1, %c0_i32 : i32
    %1 = arith.extui %0 : i1 to i32
    %c0_i32_0 = arith.constant 0 : i32
    %2 = arith.cmpi ne, %1, %c0_i32_0 : i32
    scf.if %2 {
      %cst_10 = arith.constant 0.000000e+00 : f32
      %12 = vector.broadcast %cst_10 : f32 to vector<128x32xf32>
      %c0_11 = arith.constant 0 : index
      %c0_12 = arith.constant 0 : index
      %13 = vector.load %arg10[%c0_11, %c0_12] : memref<128x32xf32, #tpu.memory_space<vmem>>, vector<128x32xf32>
      tpu.vector_store %arg10[%c0_11, %c0_12], %12 {strides = array<i32>} : memref<128x32xf32, #tpu.memory_space<vmem>>, vector<128x32xf32>,
    } else {
    }
    %c0 = arith.constant 0 : index
    %c0_1 = arith.constant 0 : index
    %3 = vector.load %arg10[%c0, %c0_1] : memref<128x32xf32, #tpu.memory_space<vmem>>, vector<128x32xf32>
    %c0_2 = arith.constant 0 : index
    %c0_3 = arith.constant 0 : index
    %4 = vector.load %arg2[%c0_2, %c0_3] : memref<128x128xbf16, #tpu.memory_space<vmem>>, vector<128x128xbf16>
    %c0_4 = arith.constant 0 : index
    %c0_5 = arith.constant 0 : index
    %5 = vector.load %arg3[%c0_4, %c0_5] : memref<128x32xbf16, #tpu.memory_space<vmem>>, vector<128x32xbf16>
    %cst = arith.constant dense<0.000000e+00> : vector<128x32xf32>
    %6 = tpu.matmul %4, %5, %cst {dimension_numbers = #tpu.dot_dimension_numbers<[1], [0], [0], [1], [0, 0, 1, 1], [], []>} : vector<128x128xbf16>, vector<128x32xbf16>, vector<128x32xf32> -> vector<128x32xf32>
    %7 = arith.addf %3, %6 : vector<128x32xf32>
    %c0_6 = arith.constant 0 : index
    %c0_7 = arith.constant 0 : index
    %8 = vector.load %arg10[%c0_6, %c0_7] : memref<128x32xf32, #tpu.memory_space<vmem>>, vector<128x32xf32>
    tpu.vector_store %arg10[%c0_6, %c0_7], %7 {strides = array<i32>} : memref<128x32xf32, #tpu.memory_space<vmem>>, vector<128x32xf32>,
    %c0_i32_8 = arith.constant 0 : i32
    %9 = arith.cmpi eq, %arg1, %c0_i32_8 : i32
    %10 = arith.extui %9 : i1 to i32
    %c0_i32_9 = arith.constant 0 : i32
    %11 = arith.cmpi ne, %10, %c0_i32_9 : i32
    scf.if %11 {
      %c0_10 = arith.constant 0 : index
      %c0_11 = arith.constant 0 : index
      %12 = vector.load %arg10[%c0_10, %c0_11] : memref<128x32xf32, #tpu.memory_space<vmem>>, vector<128x32xf32>
      %c0_12 = arith.constant 0 : index
      %c0_13 = arith.constant 0 : index
      %13 = vector.load %arg4[%c0_12, %c0_13] : memref<128x32xbf16, #tpu.memory_space<vmem>>, vector<128x32xbf16>
      %14 = arith.extf %13 : vector<128x32xbf16> to vector<128x32xf32>
      %c0_14 = arith.constant 0 : index
      %c0_15 = arith.constant 0 : index
      %15 = vector.load %arg5[%c0_14, %c0_15] : memref<32x32xf32, #tpu.memory_space<vmem>>, vector<32x32xf32>
      %cst_16 = arith.constant dense<0.000000e+00> : vector<128x32xf32>
      %16 = tpu.matmul %12, %15, %cst_16 {dimension_numbers = #tpu.dot_dimension_numbers<[1], [0], [0], [1], [0, 0, 1, 1], [], []>} : vector<128x32xf32>, vector<32x32xf32>, vector<128x32xf32> -> vector<128x32xf32>
      %17 = arith.mulf %14, %12 : vector<128x32xf32>
      %c0_17 = arith.constant 0 : index
      %c0_18 = arith.constant 0 : index
      %18 = vector.load %arg6[%c0_17, %c0_18] : memref<32x32xf32, #tpu.memory_space<vmem>>, vector<32x32xf32>
      %cst_19 = arith.constant dense<0.000000e+00> : vector<128x32xf32>
      %19 = tpu.matmul %17, %18, %cst_19 {dimension_numbers = #tpu.dot_dimension_numbers<[1], [0], [0], [1], [0, 0, 1, 1], [], []>} : vector<128x32xf32>, vector<32x32xf32>, vector<128x32xf32> -> vector<128x32xf32>
      %20 = arith.addf %16, %19 : vector<128x32xf32>
      %c0_20 = arith.constant 0 : index
      %c0_21 = arith.constant 0 : index
      %21 = vector.load %arg7[%c0_20, %c0_21] : memref<1x32xf32, #tpu.memory_space<vmem>>, vector<1x32xf32>
      %22 = vector.broadcast %21 : vector<1x32xf32> to vector<128x32xf32>
      %23 = arith.addf %20, %22 : vector<128x32xf32>
      %cst_22 = arith.constant 2.000000e-01 : f32
      %24 = vector.broadcast %cst_22 : f32 to vector<128x32xf32>
      %25 = arith.mulf %24, %23 : vector<128x32xf32>
      %26 = arith.maximumf %23, %25 : vector<128x32xf32>
      %27 = arith.truncf %26 : vector<128x32xf32> to vector<128x32xbf16>
      %c0_23 = arith.constant 0 : index
      %c0_24 = arith.constant 0 : index
      %28 = vector.load %arg8[%c0_23, %c0_24] : memref<128x32xbf16, #tpu.memory_space<vmem>>, vector<128x32xbf16>
      tpu.vector_store %arg8[%c0_23, %c0_24], %27 {strides = array<i32>} : memref<128x32xbf16, #tpu.memory_space<vmem>>, vector<128x32xbf16>,
      %29 = arith.mulf %26, %26 : vector<128x32xf32>
      %cst_25 = arith.constant dense<0.000000e+00> : vector<128xf32>
      %30 = vector.multi_reduction <add>, %29, %cst_25 [1] : vector<128x32xf32> to vector<128xf32>
      %31 = vector.shape_cast %30 : vector<128xf32> to vector<128x1xf32>
      %cst_26 = arith.constant 1.000000e-24 : f32
      %32 = vector.broadcast %cst_26 : f32 to vector<128x1xf32>
      %33 = arith.maximumf %31, %32 : vector<128x1xf32>
      %34 = math.rsqrt %33 : vector<128x1xf32>
      %35 = vector.broadcast %34 : vector<128x1xf32> to vector<128x32xf32>
      %36 = arith.mulf %26, %35 : vector<128x32xf32>
      %c0_27 = arith.constant 0 : index
      %c0_28 = arith.constant 0 : index
      %37 = vector.load %arg9[%c0_27, %c0_28] : memref<128x32xf32, #tpu.memory_space<vmem>>, vector<128x32xf32>
      tpu.vector_store %arg9[%c0_27, %c0_28], %36 {strides = array<i32>} : memref<128x32xf32, #tpu.memory_space<vmem>>, vector<128x32xf32>,
    } else {
    }
    return
  }
  func.func @transform_0(%arg0: i32, %arg1: i32) -> (i32, i32) {
    %c0_i32 = arith.constant 0 : i32
    return %arg0, %arg1 : i32, i32
  }
  func.func @transform_1(%arg0: i32, %arg1: i32) -> (i32, i32) {
    %c0_i32 = arith.constant 0 : i32
    %c0_i32_0 = arith.constant 0 : i32
    return %arg1, %c0_i32 : i32, i32
  }
  func.func @transform_2(%arg0: i32, %arg1: i32) -> (i32, i32) {
    %c0_i32 = arith.constant 0 : i32
    %c0_i32_0 = arith.constant 0 : i32
    return %arg0, %c0_i32 : i32, i32
  }
  func.func @transform_3(%arg0: i32, %arg1: i32) -> (i32, i32) {
    %c0_i32 = arith.constant 0 : i32
    %c0_i32_0 = arith.constant 0 : i32
    %c0_i32_1 = arith.constant 0 : i32
    return %c0_i32, %c0_i32_0 : i32, i32
  }
  func.func @transform_4(%arg0: i32, %arg1: i32) -> (i32, i32) {
    %c0_i32 = arith.constant 0 : i32
    %c0_i32_0 = arith.constant 0 : i32
    %c0_i32_1 = arith.constant 0 : i32
    return %c0_i32, %c0_i32_0 : i32, i32
  }
  func.func @transform_5(%arg0: i32, %arg1: i32) -> (i32, i32) {
    %c0_i32 = arith.constant 0 : i32
    %c0_i32_0 = arith.constant 0 : i32
    %c0_i32_1 = arith.constant 0 : i32
    return %c0_i32, %c0_i32_0 : i32, i32
  }
  func.func @transform_6(%arg0: i32, %arg1: i32) -> (i32, i32) {
    %c0_i32 = arith.constant 0 : i32
    %c0_i32_0 = arith.constant 0 : i32
    return %arg0, %c0_i32 : i32, i32
  }
  func.func @transform_7(%arg0: i32, %arg1: i32) -> (i32, i32) {
    %c0_i32 = arith.constant 0 : i32
    %c0_i32_0 = arith.constant 0 : i32
    return %arg0, %c0_i32 : i32, i32
  }
}

module attributes {stable_mosaic.version = 11 : i64} {
  func.func @_ngcf_layer_kernel(%arg0: i32, %arg1: i32, %arg2: memref<128x128xbf16, #tpu.memory_space<vmem>>, %arg3: memref<128x32xbf16, #tpu.memory_space<vmem>>, %arg4: memref<128x32xbf16, #tpu.memory_space<vmem>>, %arg5: memref<32x32xf32, #tpu.memory_space<vmem>>, %arg6: memref<32x32xf32, #tpu.memory_space<vmem>>, %arg7: memref<1x32xf32, #tpu.memory_space<vmem>>, %arg8: memref<128x32xbf16, #tpu.memory_space<vmem>>, %arg9: memref<128x32xf32, #tpu.memory_space<vmem>>, %arg10: memref<128x32xf32, #tpu.memory_space<vmem>>) attributes {dimension_semantics = [#tpu.dimension_semantics<parallel>, #tpu.dimension_semantics<arbitrary>], iteration_bounds = array<i64: 1, 1>, scalar_prefetch = 0 : i64, scratch_operands = 1 : i64, tpu.core_type = #tpu.core_type<tc>, window_params = [{transform_indices = @transform_0, window_bounds = array<i64: 128, 128>}, {transform_indices = @transform_1, window_bounds = array<i64: 128, 32>}, {transform_indices = @transform_2, window_bounds = array<i64: 128, 32>}, {pipeline_mode = #tpu.pipeline_mode<synchronous>, transform_indices = @transform_3, window_bounds = array<i64: 32, 32>}, {pipeline_mode = #tpu.pipeline_mode<synchronous>, transform_indices = @transform_4, window_bounds = array<i64: 32, 32>}, {pipeline_mode = #tpu.pipeline_mode<synchronous>, transform_indices = @transform_5, window_bounds = array<i64: 1, 32>}, {transform_indices = @transform_6, window_bounds = array<i64: 128, 32>}, {transform_indices = @transform_7, window_bounds = array<i64: 128, 32>}]} {
    %c0_i32 = arith.constant 0 : i32
    %0 = arith.cmpi eq, %arg1, %c0_i32 : i32
    %1 = arith.extui %0 : i1 to i32
    %c0_i32_0 = arith.constant 0 : i32
    %2 = arith.cmpi ne, %1, %c0_i32_0 : i32
    scf.if %2 {
      %cst_10 = arith.constant 0.000000e+00 : f32
      %12 = vector.broadcast %cst_10 : f32 to vector<128x32xf32>
      %c0_11 = arith.constant 0 : index
      %c0_12 = arith.constant 0 : index
      %13 = vector.load %arg10[%c0_11, %c0_12] : memref<128x32xf32, #tpu.memory_space<vmem>>, vector<128x32xf32>
      tpu.vector_store %arg10[%c0_11, %c0_12], %12 {strides = array<i32>} : memref<128x32xf32, #tpu.memory_space<vmem>>, vector<128x32xf32>,
    } else {
    }
    %c0 = arith.constant 0 : index
    %c0_1 = arith.constant 0 : index
    %3 = vector.load %arg10[%c0, %c0_1] : memref<128x32xf32, #tpu.memory_space<vmem>>, vector<128x32xf32>
    %c0_2 = arith.constant 0 : index
    %c0_3 = arith.constant 0 : index
    %4 = vector.load %arg2[%c0_2, %c0_3] : memref<128x128xbf16, #tpu.memory_space<vmem>>, vector<128x128xbf16>
    %c0_4 = arith.constant 0 : index
    %c0_5 = arith.constant 0 : index
    %5 = vector.load %arg3[%c0_4, %c0_5] : memref<128x32xbf16, #tpu.memory_space<vmem>>, vector<128x32xbf16>
    %cst = arith.constant dense<0.000000e+00> : vector<128x32xf32>
    %6 = tpu.matmul %4, %5, %cst {dimension_numbers = #tpu.dot_dimension_numbers<[1], [0], [0], [1], [0, 0, 1, 1], [], []>} : vector<128x128xbf16>, vector<128x32xbf16>, vector<128x32xf32> -> vector<128x32xf32>
    %7 = arith.addf %3, %6 : vector<128x32xf32>
    %c0_6 = arith.constant 0 : index
    %c0_7 = arith.constant 0 : index
    %8 = vector.load %arg10[%c0_6, %c0_7] : memref<128x32xf32, #tpu.memory_space<vmem>>, vector<128x32xf32>
    tpu.vector_store %arg10[%c0_6, %c0_7], %7 {strides = array<i32>} : memref<128x32xf32, #tpu.memory_space<vmem>>, vector<128x32xf32>,
    %c0_i32_8 = arith.constant 0 : i32
    %9 = arith.cmpi eq, %arg1, %c0_i32_8 : i32
    %10 = arith.extui %9 : i1 to i32
    %c0_i32_9 = arith.constant 0 : i32
    %11 = arith.cmpi ne, %10, %c0_i32_9 : i32
    scf.if %11 {
      %c0_10 = arith.constant 0 : index
      %c0_11 = arith.constant 0 : index
      %12 = vector.load %arg10[%c0_10, %c0_11] : memref<128x32xf32, #tpu.memory_space<vmem>>, vector<128x32xf32>
      %c0_12 = arith.constant 0 : index
      %c0_13 = arith.constant 0 : index
      %13 = vector.load %arg4[%c0_12, %c0_13] : memref<128x32xbf16, #tpu.memory_space<vmem>>, vector<128x32xbf16>
      %14 = arith.extf %13 : vector<128x32xbf16> to vector<128x32xf32>
      %c0_14 = arith.constant 0 : index
      %c0_15 = arith.constant 0 : index
      %15 = vector.load %arg5[%c0_14, %c0_15] : memref<32x32xf32, #tpu.memory_space<vmem>>, vector<32x32xf32>
      %cst_16 = arith.constant dense<0.000000e+00> : vector<128x32xf32>
      %16 = tpu.matmul %12, %15, %cst_16 {dimension_numbers = #tpu.dot_dimension_numbers<[1], [0], [0], [1], [0, 0, 1, 1], [], []>} : vector<128x32xf32>, vector<32x32xf32>, vector<128x32xf32> -> vector<128x32xf32>
      %17 = arith.mulf %14, %12 : vector<128x32xf32>
      %c0_17 = arith.constant 0 : index
      %c0_18 = arith.constant 0 : index
      %18 = vector.load %arg6[%c0_17, %c0_18] : memref<32x32xf32, #tpu.memory_space<vmem>>, vector<32x32xf32>
      %cst_19 = arith.constant dense<0.000000e+00> : vector<128x32xf32>
      %19 = tpu.matmul %17, %18, %cst_19 {dimension_numbers = #tpu.dot_dimension_numbers<[1], [0], [0], [1], [0, 0, 1, 1], [], []>} : vector<128x32xf32>, vector<32x32xf32>, vector<128x32xf32> -> vector<128x32xf32>
      %20 = arith.addf %16, %19 : vector<128x32xf32>
      %c0_20 = arith.constant 0 : index
      %c0_21 = arith.constant 0 : index
      %21 = vector.load %arg7[%c0_20, %c0_21] : memref<1x32xf32, #tpu.memory_space<vmem>>, vector<1x32xf32>
      %22 = vector.broadcast %21 : vector<1x32xf32> to vector<128x32xf32>
      %23 = arith.addf %20, %22 : vector<128x32xf32>
      %cst_22 = arith.constant 2.000000e-01 : f32
      %24 = vector.broadcast %cst_22 : f32 to vector<128x32xf32>
      %25 = arith.mulf %24, %23 : vector<128x32xf32>
      %26 = arith.maximumf %23, %25 : vector<128x32xf32>
      %27 = arith.truncf %26 : vector<128x32xf32> to vector<128x32xbf16>
      %c0_23 = arith.constant 0 : index
      %c0_24 = arith.constant 0 : index
      %28 = vector.load %arg8[%c0_23, %c0_24] : memref<128x32xbf16, #tpu.memory_space<vmem>>, vector<128x32xbf16>
      tpu.vector_store %arg8[%c0_23, %c0_24], %27 {strides = array<i32>} : memref<128x32xbf16, #tpu.memory_space<vmem>>, vector<128x32xbf16>,
      %29 = arith.mulf %26, %26 : vector<128x32xf32>
      %cst_25 = arith.constant dense<0.000000e+00> : vector<128xf32>
      %30 = vector.multi_reduction <add>, %29, %cst_25 [1] : vector<128x32xf32> to vector<128xf32>
      %31 = vector.shape_cast %30 : vector<128xf32> to vector<128x1xf32>
      %cst_26 = arith.constant 1.000000e-24 : f32
      %32 = vector.broadcast %cst_26 : f32 to vector<128x1xf32>
      %33 = arith.maximumf %31, %32 : vector<128x1xf32>
      %34 = math.rsqrt %33 : vector<128x1xf32>
      %35 = vector.broadcast %34 : vector<128x1xf32> to vector<128x32xf32>
      %36 = arith.mulf %26, %35 : vector<128x32xf32>
      %c0_27 = arith.constant 0 : index
      %c0_28 = arith.constant 0 : index
      %37 = vector.load %arg9[%c0_27, %c0_28] : memref<128x32xf32, #tpu.memory_space<vmem>>, vector<128x32xf32>
      tpu.vector_store %arg9[%c0_27, %c0_28], %36 {strides = array<i32>} : memref<128x32xf32, #tpu.memory_space<vmem>>, vector<128x32xf32>,
    } else {
    }
    return
  }
  func.func @transform_0(%arg0: i32, %arg1: i32) -> (i32, i32) {
    %c0_i32 = arith.constant 0 : i32
    return %arg0, %arg1 : i32, i32
  }
  func.func @transform_1(%arg0: i32, %arg1: i32) -> (i32, i32) {
    %c0_i32 = arith.constant 0 : i32
    %c0_i32_0 = arith.constant 0 : i32
    return %arg1, %c0_i32 : i32, i32
  }
  func.func @transform_2(%arg0: i32, %arg1: i32) -> (i32, i32) {
    %c0_i32 = arith.constant 0 : i32
    %c0_i32_0 = arith.constant 0 : i32
    return %arg0, %c0_i32 : i32, i32
  }
  func.func @transform_3(%arg0: i32, %arg1: i32) -> (i32, i32) {
    %c0_i32 = arith.constant 0 : i32
    %c0_i32_0 = arith.constant 0 : i32
    %c0_i32_1 = arith.constant 0 : i32
    return %c0_i32, %c0_i32_0 : i32, i32
  }
  func.func @transform_4(%arg0: i32, %arg1: i32) -> (i32, i32) {
    %c0_i32 = arith.constant 0 : i32
    %c0_i32_0 = arith.constant 0 : i32
    %c0_i32_1 = arith.constant 0 : i32
    return %c0_i32, %c0_i32_0 : i32, i32
  }
  func.func @transform_5(%arg0: i32, %arg1: i32) -> (i32, i32) {
    %c0_i32 = arith.constant 0 : i32
    %c0_i32_0 = arith.constant 0 : i32
    %c0_i32_1 = arith.constant 0 : i32
    return %c0_i32, %c0_i32_0 : i32, i32
  }
  func.func @transform_6(%arg0: i32, %arg1: i32) -> (i32, i32) {
    %c0_i32 = arith.constant 0 : i32
    %c0_i32_0 = arith.constant 0 : i32
    return %arg0, %c0_i32 : i32, i32
  }
  func.func @transform_7(%arg0: i32, %arg1: i32) -> (i32, i32) {
    %c0_i32 = arith.constant 0 : i32
    %c0_i32_0 = arith.constant 0 : i32
    return %arg0, %c0_i32 : i32, i32
  }
}

</mosaic_0001>

<bundles_post_ra>
// kernel: ngcf_forward.3
= control target key start
LH: loop header
LB: loop body
LE: loop exit
PB: predicated region body
PF: predicated region fallthrough
CT: control target
= control target key end

     0   :  { %vm29_vm0 = vcmask 261120   ;;  %v1139_v14 = vmov 0.0   ;;  %vm641_vm1 = vcmask 257024   ;;  %s1617_s1 = inlined_call_operand.vmem [shape: bf16[128,32], index: 1, kind: input, shape index: {}, may-alias: {1,2}]   ;;  %s1618_s0 = inlined_call_operand.vmem [shape: bf16[128,128], index: 0, kind: input, shape index: {}]   ;;  %s1619_s3 = inlined_call_operand.vmem [shape: f32[32,32], index: 3, kind: input, shape index: {}]   ;;  %s1620_s4 = inlined_call_operand.vmem [shape: f32[32,32], index: 4, kind: input, shape index: {}]   ;;  %s1621_s2 = inlined_call_operand.vmem [shape: bf16[128,32], index: 2, kind: input, shape index: {}, may-alias: {1,2}]   ;;  %s1622_s5 = inlined_call_operand.vmem [shape: f32[1,32], index: 5, kind: input, shape index: {}]   ;;  %s1623_s6 = inlined_call_operand.vmem [shape: bf16[128,32], index: 6, kind: output, shape index: {0}]   ;;  %s1624_s7 = inlined_call_operand.vmem [shape: f32[128,32], index: 7, kind: output, shape index: {1}]  }
   0x1   :  { %v1049_v0 = vld [vmem:[%s1617_s1 + $0x38] sm:$0xff]  ;;  %v1048_v1 = vld [vmem:[%s1617_s1 + $0x30] sm:$0xff]  ;;  %v1047_v2 = vld [vmem:[%s1617_s1 + $0x28] sm:$0xff]  ;;  %30 = vst.msk [vmem:[#allocation2] sm:$0xff] %vm29_vm0, %v1139_v14 }
   0x2   :  { %190 = vmatpush.bf16.msra.mxu0 %v1049_v0  ;;  %1089 = vmatpush.bf16.msra.mxu3 %v1049_v0  ;;  %v1046_v3 = vld [vmem:[%s1617_s1 + $0x20] sm:$0xff]  ;;  %v1045_v4 = vld [vmem:[%s1617_s1 + $0x18] sm:$0xff]  ;;  %v1044_v5 = vld [vmem:[%s1617_s1 + $0x10] sm:$0xff]  ;;  %31 = vst.msk [vmem:[#allocation2 + $0x8] sm:$0xff] %vm29_vm0, %v1139_v14 }
   0x3   :  { %v1043_v6 = vld [vmem:[%s1617_s1 + $0x8] sm:$0xff]  ;;  %v1042_v7 = vld [vmem:[%s1617_s1] sm:$0xff]  ;;  %v1040_v9 = vld [vmem:[%s1618_s0 + $0x30] sm:$0xff]  ;;  %32 = vst.msk [vmem:[#allocation2 + $0x10] sm:$0xff] %vm29_vm0, %v1139_v14 }
   0x4   :  { %v1034_v8 = vld [vmem:[%s1618_s0] sm:$0xff]  ;;  %v1035_v10 = vld [vmem:[%s1618_s0 + $0x8] sm:$0xff]  ;;  %v1041_v11 = vld [vmem:[%s1618_s0 + $0x38] sm:$0xff]  ;;  %33 = vst.msk [vmem:[#allocation2 + $0x18] sm:$0xff] %vm29_vm0, %v1139_v14 }
   0x5   :  { %v1036_v12 = vld [vmem:[%s1618_s0 + $0x10] sm:$0xff]  ;;  %v1037_v13 = vld [vmem:[%s1618_s0 + $0x18] sm:$0xff]  ;;  %34 = vst.msk [vmem:[#allocation2 + $0x20] sm:$0xff] %vm29_vm0, %v1139_v14  ;;  %v1038_v15 = vld [vmem:[%s1618_s0 + $0x20] sm:$0xff] }
   0x6   :  { %191 = vmatpush.bf16.msra.mxu0 %v1048_v1  ;;  %1090 = vmatpush.bf16.msra.mxu3 %v1048_v1  ;;  %35 = vst.msk [vmem:[#allocation2 + $0x28] sm:$0xff] %vm29_vm0, %v1139_v14  ;;  %v1039_v16 = vld [vmem:[%s1618_s0 + $0x28] sm:$0xff]  ;;  %v326_v17 = vld [vmem:[%s1619_s3 + $0x18] sm:$0xff]  ;;  %v325_v19 = vld [vmem:[%s1619_s3 + $0x10] sm:$0xff] }
   0x7   :  { %36 = vst.msk [vmem:[#allocation2 + $0x30] sm:$0xff] %vm29_vm0, %v1139_v14  ;;  %v346_v18 = vld [vmem:[%s1620_s4 + $0x18] sm:$0xff]  ;;  %520 = vmatpush.msra.mxu2 %v326_v17  ;;  %v345_v20 = vld [vmem:[%s1620_s4 + $0x10] sm:$0xff]  ;;  %v324_v21 = vld [vmem:[%s1619_s3 + $0x8] sm:$0xff] }
   0x8   :  { %37 = vst.msk [vmem:[#allocation2 + $0x38] sm:$0xff] %vm29_vm0, %v1139_v14  ;;  %407 = vmatpush.msra.mxu1 %v346_v18  ;;  %v344_v22 = vld [vmem:[%s1620_s4 + $0x8] sm:$0xff]  ;;  %v323_v23 = vld [vmem:[%s1619_s3] sm:$0xff]  ;;  %v1088_v56 = vld [vmem:[%s1621_s2 + $0x38] sm:$0xff]  }
   0x9   :  { %38 = vst.msk [vmem:[#allocation2 + $0x40] sm:$0xff] %vm29_vm0, %v1139_v14  ;;  %521 = vmatpush.msra.mxu2 %v325_v19  ;;  %v343_v24 = vld [vmem:[%s1620_s4] sm:$0xff]  ;;  %v47_v30 = vld [vmem:[#allocation2 + $0x8] sm:$0xff]  ;;  %v1080_v59 = vunpack.c.l.bf16 %v1088_v56 }
   0xa   :  { %192 = vmatpush.bf16.msra.mxu0 %v1047_v2  ;;  %1091 = vmatpush.bf16.msra.mxu3 %v1047_v2  ;;  %39 = vst.msk [vmem:[#allocation2 + $0x48] sm:$0xff] %vm29_vm0, %v1139_v14  ;;  %v46_v25 = vld [vmem:[#allocation2] sm:$0xff]  ;;  %v48_v39 = vld [vmem:[#allocation2 + $0x10] sm:$0xff]  ;;  %v1082_v47 = vld [vmem:[%s1621_s2 + $0x8] sm:$0xff]  }
   0xb   :  { %40 = vst.msk [vmem:[#allocation2 + $0x50] sm:$0xff] %vm29_vm0, %v1139_v14  ;;  %408 = vmatpush.msra.mxu1 %v345_v20  ;;  %522 = vmatpush.msra.mxu2 %v324_v21  ;;  %v1051_v28 = vld [vmem:[%s1621_s2] sm:$0xff]   ;;  %v49_v49 = vld [vmem:[#allocation2 + $0x18] sm:$0xff]  ;;  %v1056_v51 = vunpack.c.l.bf16 %v1082_v47  ;;  %v1057_v62 = vunpack.c.h.bf16 %v1082_v47 }
   0xc   :  { %41 = vst.msk [vmem:[#allocation2 + $0x58] sm:$0xff] %vm29_vm0, %v1139_v14  ;;  %v1052_v32 = vunpack.c.l.bf16 %v1051_v28  ;;  %v1053_v41 = vunpack.c.h.bf16 %v1051_v28  ;;  %v50_v60 = vld [vmem:[#allocation2 + $0x20] sm:$0xff] }
   0xd   :  { %42 = vst.msk [vmem:[#allocation2 + $0x60] sm:$0xff] %vm29_vm0, %v1139_v14  ;;  %409 = vmatpush.msra.mxu1 %v344_v22  ;;  %523 = vmatpush.msra.mxu2 %v323_v23 }
   0xe   :  { %193 = vmatpush.bf16.msra.mxu0 %v1046_v3  ;;  %1092 = vmatpush.bf16.msra.mxu3 %v1046_v3  ;;  %43 = vst.msk [vmem:[#allocation2 + $0x68] sm:$0xff] %vm29_vm0, %v1139_v14 }
   0xf   :  { %44 = vst.msk [vmem:[#allocation2 + $0x70] sm:$0xff] %vm29_vm0, %v1139_v14  ;;  %410 = vmatpush.msra.mxu1 %v343_v24 }
  0x10   :  { %45 = vst.msk [vmem:[#allocation2 + $0x78] sm:$0xff] %vm29_vm0, %v1139_v14 }
  0x12   :  { %194 = vmatpush.bf16.msra.mxu0 %v1045_v4  ;;  %1093 = vmatpush.bf16.msra.mxu3 %v1045_v4 }
  0x14   :  { %v58_v29 = vld [vmem:[#allocation2 + $0x60] sm:$0xff] }
  0x15   :  { %v59_v38 = vld [vmem:[#allocation2 + $0x68] sm:$0xff] }
  0x16   :  { %195 = vmatpush.bf16.msra.mxu0 %v1044_v5  ;;  %1094 = vmatpush.bf16.msra.mxu3 %v1044_v5  ;;  %v60_v48 = vld [vmem:[#allocation2 + $0x70] sm:$0xff] }
  0x17   :  { %v61_v58 = vld [vmem:[#allocation2 + $0x78] sm:$0xff] }
  0x1a   :  { %196 = vmatpush.bf16.msra.mxu0 %v1043_v6  ;;  %1095 = vmatpush.bf16.msra.mxu3 %v1043_v6  ;;  %v1083_v6 = vld [vmem:[%s1621_s2 + $0x10] sm:$0xff]  }
  0x1e   :  { %197 = vmatpush.bf16.msra.mxu0 %v1042_v7  ;;  %1096 = vmatpush.bf16.msra.mxu3 %v1042_v7  ;;  %v1081_v7 = vunpack.c.h.bf16 %v1088_v56 }
  0x21   :  { %198 = vmatmul.bf16.vlgmr.msra.gmra.mxu0 %v1034_v8  ;;  %228 = vmatmul.bf16.vlgmr.msra.gmra.mxu3 %v1040_v9  ;;  %v51_v8 = vld [vmem:[#allocation2 + $0x28] sm:$0xff]  ;;  %v1060_v9 = vunpack.c.l.bf16 %v1083_v6 }
  0x22   :  { %1097 = vmatpush.msrb.mxu3 %v346_v18 }
  0x24   :  { %1098 = vmatpush.msrb.mxu3 %v345_v20 }
  0x26   :  { %1099 = vmatpush.msrb.mxu3 %v344_v22  ;;  %v1084_v22 = vld [vmem:[%s1621_s2 + $0x18] sm:$0xff]  }
  0x28   :  { %1100 = vmatpush.msrb.mxu3 %v343_v24  ;;  %v1064_v24 = vunpack.c.l.bf16 %v1084_v22 }
  0x2a   :  { %1101 = vmatpush.msra.mxu3 %v326_v17  ;;  %v1061_v17 = vunpack.c.h.bf16 %v1083_v6 }
  0x2c   :  { %1102 = vmatpush.msra.mxu3 %v325_v19 }
  0x2e   :  { %1103 = vmatpush.msra.mxu3 %v324_v21 }
  0x30   :  { %1104 = vmatpush.msra.mxu3 %v323_v23  ;;  %v53_v23 = vld [vmem:[#allocation2 + $0x38] sm:$0xff] }
  0x31   :  { %203 = vmatmul.bf16.gmra.mxu0 %v1035_v10  ;;  %233 = vmatmul.bf16.gmra.mxu3 %v1041_v11 }
  0x41   :  { %208 = vmatmul.bf16.gmra.mxu0 %v1036_v12 }
  0x51   :  { %213 = vmatmul.bf16.gmra.mxu0 %v1037_v13 }
  0x61   :  { %218 = vmatmul.bf16.gmra.mxu0 %v1038_v15 }
  0x71   :  { %223 = vmatmul.bf16.gmra.mxu0 %v1039_v16  ;;  %v52_v16 = vld [vmem:[#allocation2 + $0x30] sm:$0xff] }
  0x9e   :  { %v199_v26 = vpop.f32.mrf.mxu0 }
  0x9f   :  { %v239_v27 = vadd.f32 %v199_v26, %v46_v25 }
  0xa1   :  { %256 = vst.msk [vmem:[#allocation2] sm:$0xff] %vm29_vm0, %v239_v27 }
  0xa4   :  { %v229_v31 = vpop.f32.mrf.mxu3 }
  0xa5   :  { %v251_v33 = vadd.f32 %v229_v31, %v58_v29  ;;  %v54_v29 = vld [vmem:[#allocation2 + $0x40] sm:$0xff] }
  0xa6   :  { %v201_v34 = vpop.f32.mrf.mxu0 }
  0xa7   :  { %v240_v35 = vadd.f32 %v201_v34, %v47_v30  ;;  %268 = vst.msk [vmem:[#allocation2 + $0x60] sm:$0xff] %vm29_vm0, %v251_v33  ;;  %v1065_v30 = vunpack.c.h.bf16 %v1084_v22 }
  0xa8   :  { %v275_v36 = vld [vmem:[#allocation2] sm:$0xff] }
  0xa9   :  { %257 = vst.msk [vmem:[#allocation2 + $0x8] sm:$0xff] %vm29_vm0, %v240_v35  ;;  %v327_v37 = vmul.f32 %v1052_v32, %v275_v36  ;;  %1018 = vmatmul.msk.f32.vlgmr.msra.gmra.mxu2 %vm29_vm0, %v275_v36  ;;  %v1085_v35 = vld [vmem:[%s1621_s2 + $0x20] sm:$0xff]   ;;  %v55_v36 = vld [vmem:[#allocation2 + $0x48] sm:$0xff] }
  0xab   :  { %1002 = vmatmul.msk.f32.vlgmr.msra.gmra.mxu1 %vm29_vm0, %v327_v37  ;;  %v1068_v37 = vunpack.c.l.bf16 %v1085_v35 }
  0xac   :  { %v231_v40 = vpop.f32.mrf.mxu3 }
  0xad   :  { %v252_v42 = vadd.f32 %v231_v40, %v59_v38 }
  0xae   :  { %v204_v43 = vpop.f32.mrf.mxu0 }
  0xaf   :  { %v241_v44 = vadd.f32 %v204_v43, %v48_v39  ;;  %269 = vst.msk [vmem:[#allocation2 + $0x68] sm:$0xff] %vm29_vm0, %v252_v42  ;;  %v56_v42 = vld [vmem:[#allocation2 + $0x50] sm:$0xff]  ;;  %v1069_v43 = vunpack.c.h.bf16 %v1085_v35 }
  0xb0   :  { %v276_v45 = vld [vmem:[#allocation2 + $0x8] sm:$0xff] }
  0xb1   :  { %258 = vst.msk [vmem:[#allocation2 + $0x10] sm:$0xff] %vm29_vm0, %v241_v44  ;;  %v328_v46 = vmul.f32 %v1053_v41, %v276_v45  ;;  %1019 = vmatmul.msk.f32.gmra.mxu2 %vm29_vm0, %v276_v45 }
  0xb3   :  { %1003 = vmatmul.msk.f32.gmra.mxu1 %vm29_vm0, %v328_v46 }
  0xb4   :  { %v234_v50 = vpop.f32.mrf.mxu3 }
  0xb5   :  { %v253_v52 = vadd.f32 %v234_v50, %v60_v48  ;;  %v1086_v48 = vld [vmem:[%s1621_s2 + $0x28] sm:$0xff]  }
  0xb6   :  { %v206_v53 = vpop.f32.mrf.mxu0  ;;  %v1072_v50 = vunpack.c.l.bf16 %v1086_v48 }
  0xb7   :  { %v242_v54 = vadd.f32 %v206_v53, %v49_v49  ;;  %270 = vst.msk [vmem:[#allocation2 + $0x70] sm:$0xff] %vm29_vm0, %v253_v52  ;;  %v57_v49 = vld [vmem:[#allocation2 + $0x58] sm:$0xff] }
  0xb8   :  { %v277_v55 = vld [vmem:[#allocation2 + $0x10] sm:$0xff] }
  0xb9   :  { %259 = vst.msk [vmem:[#allocation2 + $0x18] sm:$0xff] %vm29_vm0, %v242_v54  ;;  %v329_v57 = vmul.f32 %v1056_v51, %v277_v55  ;;  %1020 = vmatmul.msk.f32.gmra.mxu2 %vm29_vm0, %v277_v55  ;;  %v1073_v55 = vunpack.c.h.bf16 %v1086_v48 }
  0xbb   :  { %1004 = vmatmul.msk.f32.gmra.mxu1 %vm29_vm0, %v329_v57 }
  0xbc   :  { %v236_v61 = vpop.f32.mrf.mxu3 }
  0xbd   :  { %v254_v63 = vadd.f32 %v236_v61, %v61_v58  ;;  %v1087_v58 = vld [vmem:[%s1621_s2 + $0x30] sm:$0xff]  }
  0xbe   :  { %v209_v0 = vpop.f32.mrf.mxu0  ;;  %v289_v1 = vld [vmem:[#allocation2 + $0x70] sm:$0xff] }
  0xbf   :  { %v243_v2 = vadd.f32 %v209_v0, %v50_v60  ;;  %271 = vst.msk [vmem:[#allocation2 + $0x78] sm:$0xff] %vm29_vm0, %v254_v63  ;;  %v341_v3 = vmul.f32 %v1080_v59, %v289_v1  ;;  %v1076_v59 = vunpack.c.l.bf16 %v1087_v58  ;;  %v287_v60 = vld [vmem:[#allocation2 + $0x60] sm:$0xff]  ;;  %v288_v63 = vld [vmem:[#allocation2 + $0x68] sm:$0xff] }
  0xc0   :  { %v278_v4 = vld [vmem:[#allocation2 + $0x18] sm:$0xff] }
  0xc1   :  { %260 = vst.msk [vmem:[#allocation2 + $0x20] sm:$0xff] %vm29_vm0, %v243_v2  ;;  %v330_v5 = vmul.f32 %v1057_v62, %v278_v4  ;;  %1021 = vmatmul.msk.f32.gmra.mxu2 %vm29_vm0, %v278_v4  ;;  %1016 = vmatmul.msk.f32.vlgmr.msrb.gmra.mxu3 %vm29_vm0, %v341_v3  ;;  %v339_v61 = vmul.f32 %v1076_v59, %v287_v60  ;;  %v1077_v62 = vunpack.c.h.bf16 %v1087_v58  ;;  %v1343_v2 = vld [vmem:[%s1622_s5] ss:$0 sm:$0xff] }
  0xc3   :  { %1005 = vmatmul.msk.f32.gmra.mxu1 %vm29_vm0, %v330_v5  ;;  %v340_v0 = vmul.f32 %v1077_v62, %v288_v63 }
  0xc6   :  { %v211_v10 = vpop.f32.mrf.mxu0  ;;  %v290_v11 = vld [vmem:[#allocation2 + $0x78] sm:$0xff] }
  0xc7   :  { %v244_v12 = vadd.f32 %v211_v10, %v51_v8  ;;  %v342_v13 = vmul.f32 %v1081_v7, %v290_v11 }
  0xc8   :  { %v279_v14 = vld [vmem:[#allocation2 + $0x20] sm:$0xff] }
  0xc9   :  { %261 = vst.msk [vmem:[#allocation2 + $0x28] sm:$0xff] %vm29_vm0, %v244_v12  ;;  %v331_v15 = vmul.f32 %v1060_v9, %v279_v14  ;;  %1022 = vmatmul.msk.f32.gmra.mxu2 %vm29_vm0, %v279_v14  ;;  %1017 = vmatmul.msk.f32.gmra.mxu3 %vm29_vm0, %v342_v13 }
  0xcb   :  { %1006 = vmatmul.msk.f32.gmra.mxu1 %vm29_vm0, %v331_v15 }
  0xce   :  { %v214_v18 = vpop.f32.mrf.mxu0 }
  0xcf   :  { %v245_v19 = vadd.f32 %v214_v18, %v52_v16 }
  0xd0   :  { %v280_v20 = vld [vmem:[#allocation2 + $0x28] sm:$0xff] }
  0xd1   :  { %262 = vst.msk [vmem:[#allocation2 + $0x30] sm:$0xff] %vm29_vm0, %v245_v19  ;;  %v332_v21 = vmul.f32 %v1061_v17, %v280_v20  ;;  %1023 = vmatmul.msk.f32.gmra.mxu2 %vm29_vm0, %v280_v20  ;;  %1032 = vmatmul.msk.f32.vlgmr.msra.gmra.mxu3 %vm29_vm0, %v289_v1 }
  0xd3   :  { %1007 = vmatmul.msk.f32.gmra.mxu1 %vm29_vm0, %v332_v21 }
  0xd6   :  { %v216_v25 = vpop.f32.mrf.mxu0 }
  0xd7   :  { %v246_v26 = vadd.f32 %v216_v25, %v53_v23 }
  0xd8   :  { %v281_v27 = vld [vmem:[#allocation2 + $0x30] sm:$0xff] }
  0xd9   :  { %263 = vst.msk [vmem:[#allocation2 + $0x38] sm:$0xff] %vm29_vm0, %v246_v26  ;;  %v333_v28 = vmul.f32 %v1064_v24, %v281_v27  ;;  %1024 = vmatmul.msk.f32.gmra.mxu2 %vm29_vm0, %v281_v27  ;;  %1033 = vmatmul.msk.f32.gmra.mxu3 %vm29_vm0, %v290_v11 }
  0xdb   :  { %1008 = vmatmul.msk.f32.gmra.mxu1 %vm29_vm0, %v333_v28 }
  0xde   :  { %v219_v31 = vpop.f32.mrf.mxu0 }
  0xdf   :  { %v247_v32 = vadd.f32 %v219_v31, %v54_v29 }
  0xe0   :  { %v282_v33 = vld [vmem:[#allocation2 + $0x38] sm:$0xff] }
  0xe1   :  { %264 = vst.msk [vmem:[#allocation2 + $0x40] sm:$0xff] %vm29_vm0, %v247_v32  ;;  %v334_v34 = vmul.f32 %v1065_v30, %v282_v33  ;;  %1025 = vmatmul.msk.f32.gmra.mxu2 %vm29_vm0, %v282_v33 }
  0xe3   :  { %1009 = vmatmul.msk.f32.gmra.mxu1 %vm29_vm0, %v334_v34 }
  0xe6   :  { %v221_v38 = vpop.f32.mrf.mxu0 }
  0xe7   :  { %v248_v39 = vadd.f32 %v221_v38, %v55_v36 }
  0xe8   :  { %v283_v40 = vld [vmem:[#allocation2 + $0x40] sm:$0xff] }
  0xe9   :  { %265 = vst.msk [vmem:[#allocation2 + $0x48] sm:$0xff] %vm29_vm0, %v248_v39  ;;  %v335_v41 = vmul.f32 %v1068_v37, %v283_v40  ;;  %1026 = vmatmul.msk.f32.gmra.mxu2 %vm29_vm0, %v283_v40 }
  0xeb   :  { %1010 = vmatmul.msk.f32.gmra.mxu1 %vm29_vm0, %v335_v41 }
  0xee   :  { %v224_v44 = vpop.f32.mrf.mxu0 }
  0xef   :  { %v249_v45 = vadd.f32 %v224_v44, %v56_v42 }
  0xf0   :  { %v284_v46 = vld [vmem:[#allocation2 + $0x48] sm:$0xff] }
  0xf1   :  { %266 = vst.msk [vmem:[#allocation2 + $0x50] sm:$0xff] %vm29_vm0, %v249_v45  ;;  %v336_v47 = vmul.f32 %v1069_v43, %v284_v46  ;;  %1027 = vmatmul.msk.f32.gmra.mxu2 %vm29_vm0, %v284_v46 }
  0xf3   :  { %1011 = vmatmul.msk.f32.gmra.mxu1 %vm29_vm0, %v336_v47 }
  0xf6   :  { %v226_v51 = vpop.f32.mrf.mxu0 }
  0xf7   :  { %v250_v52 = vadd.f32 %v226_v51, %v57_v49 }
  0xf8   :  { %v285_v53 = vld [vmem:[#allocation2 + $0x50] sm:$0xff] }
  0xf9   :  { %267 = vst.msk [vmem:[#allocation2 + $0x58] sm:$0xff] %vm29_vm0, %v250_v52  ;;  %v337_v54 = vmul.f32 %v1072_v50, %v285_v53  ;;  %1028 = vmatmul.msk.f32.gmra.mxu2 %vm29_vm0, %v285_v53 }
  0xfb   :  { %1012 = vmatmul.msk.f32.gmra.mxu1 %vm29_vm0, %v337_v54 }
 0x100   :  { %v286_v56 = vld [vmem:[#allocation2 + $0x58] sm:$0xff] }
 0x101   :  { %v338_v57 = vmul.f32 %v1073_v55, %v286_v56  ;;  %1029 = vmatmul.msk.f32.gmra.mxu2 %vm29_vm0, %v286_v56 }
 0x103   :  { %1013 = vmatmul.msk.f32.gmra.mxu1 %vm29_vm0, %v338_v57 }
 0x109   :  { %1030 = vmatmul.msk.f32.gmra.mxu2 %vm29_vm0, %v287_v60 }
 0x10b   :  { %1014 = vmatmul.msk.f32.gmra.mxu1 %vm29_vm0, %v339_v61 }
 0x111   :  { %1031 = vmatmul.msk.f32.gmra.mxu2 %vm29_vm0, %v288_v63 }
 0x113   :  { %1015 = vmatmul.msk.f32.gmra.mxu1 %vm29_vm0, %v340_v0 }
 0x128   :  { %v412_v1 = vpop.f32.mrf.mxu1 }
 0x12c   :  { %v525_v3 = vpop.f32.mrf.mxu2 }
 0x12d   :  { %v526_v4 = vadd.f32 %v525_v3, %v412_v1 }
 0x12f   :  { %v577_v5 = vadd.f32 %v1343_v2, %v526_v4 }
 0x130   :  { %v415_v6 = vpop.f32.mrf.mxu1 }
 0x131   :  { %v593_v7 = vmul.f32 0.2, %v577_v5 }
 0x133   :  { %v1346_v8 = vmax.f32 %v577_v5, %v593_v7 }
 0x134   :  { %v528_v9 = vpop.f32.mrf.mxu2 }
 0x135   :  { %v625_v10 = vpack.c.bf16 %v1346_v8, %v1346_v8  ;;  %v529_v11 = vadd.f32 %v528_v9, %v415_v6  ;;  %v658_v12 = vmul.f32 %v1346_v8, %v1346_v8 }
 0x137   :  { %642 = vst.msk [vmem:[%s1623_s6] sm:$0xf] %vm641_vm1, %v625_v10  ;;  %v578_v13 = vadd.f32 %v1343_v2, %v529_v11  ;;  %v674_v14 = vsel %vm29_vm0, %v658_v12, 0.0 }
 0x138   :  { %675 = vadd.xlane.f32.xlu0 %v674_v14  ;;  %v418_v15 = vpop.f32.mrf.mxu1 }
 0x139   :  { %v594_v16 = vmul.f32 0.2, %v578_v13 }
 0x13b   :  { %v1358_v17 = vmax.f32 %v578_v13, %v594_v16 }
 0x13c   :  { %v531_v18 = vpop.f32.mrf.mxu2 }
 0x13d   :  { %v626_v19 = vpack.c.bf16 %v1358_v17, %v1358_v17  ;;  %v532_v20 = vadd.f32 %v531_v18, %v418_v15  ;;  %v659_v21 = vmul.f32 %v1358_v17, %v1358_v17 }
 0x13f   :  { %643 = vst.msk [vmem:[%s1623_s6 + $0x4] sm:$0xf] %vm641_vm1, %v626_v19  ;;  %v579_v22 = vadd.f32 %v1343_v2, %v532_v20  ;;  %v677_v23 = vsel %vm29_vm0, %v659_v21, 0.0 }
 0x140   :  { %678 = vadd.xlane.f32.xlu0 %v677_v23  ;;  %v421_v24 = vpop.f32.mrf.mxu1 }
 0x141   :  { %v595_v25 = vmul.f32 0.2, %v579_v22 }
 0x143   :  { %v1370_v26 = vmax.f32 %v579_v22, %v595_v25 }
 0x144   :  { %v534_v27 = vpop.f32.mrf.mxu2  ;;  %v454_v28 = vpop.f32.mrf.mxu3 }
 0x145   :  { %v627_v29 = vpack.c.bf16 %v1370_v26, %v1370_v26  ;;  %v535_v30 = vadd.f32 %v534_v27, %v421_v24  ;;  %v660_v31 = vmul.f32 %v1370_v26, %v1370_v26 }
 0x147   :  { %644 = vst.msk [vmem:[%s1623_s6 + $0x8] sm:$0xf] %vm641_vm1, %v627_v29  ;;  %v580_v32 = vadd.f32 %v1343_v2, %v535_v30  ;;  %v680_v33 = vsel %vm29_vm0, %v660_v31, 0.0 }
 0x148   :  { %681 = vadd.xlane.f32.xlu1 %v680_v33  ;;  %v424_v34 = vpop.f32.mrf.mxu1 }
 0x149   :  { %v596_v35 = vmul.f32 0.2, %v580_v32 }
 0x14b   :  { %v1382_v36 = vmax.f32 %v580_v32, %v596_v35 }
 0x14c   :  { %v537_v37 = vpop.f32.mrf.mxu2  ;;  %v457_v38 = vpop.f32.mrf.mxu3 }
 0x14d   :  { %v628_v39 = vpack.c.bf16 %v1382_v36, %v1382_v36  ;;  %v538_v40 = vadd.f32 %v537_v37, %v424_v34  ;;  %v661_v41 = vmul.f32 %v1382_v36, %v1382_v36 }
 0x14f   :  { %645 = vst.msk [vmem:[%s1623_s6 + $0xc] sm:$0xf] %vm641_vm1, %v628_v39  ;;  %v581_v42 = vadd.f32 %v1343_v2, %v538_v40  ;;  %v683_v43 = vsel %vm29_vm0, %v661_v41, 0.0 }
 0x150   :  { %684 = vadd.xlane.f32.xlu1 %v683_v43  ;;  %v427_v44 = vpop.f32.mrf.mxu1 }
 0x151   :  { %v597_v45 = vmul.f32 0.2, %v581_v42 }
 0x153   :  { %v1394_v46 = vmax.f32 %v581_v42, %v597_v45 }
 0x154   :  { %v540_v47 = vpop.f32.mrf.mxu2  ;;  %v567_v48 = vpop.f32.mrf.mxu3 }
 0x155   :  { %v629_v49 = vpack.c.bf16 %v1394_v46, %v1394_v46  ;;  %v541_v50 = vadd.f32 %v540_v47, %v427_v44  ;;  %v662_v51 = vmul.f32 %v1394_v46, %v1394_v46  ;;  %v568_v54 = vadd.f32 %v567_v48, %v454_v28 }
 0x157   :  { %646 = vst.msk [vmem:[%s1623_s6 + $0x10] sm:$0xf] %vm641_vm1, %v629_v49  ;;  %v582_v52 = vadd.f32 %v1343_v2, %v541_v50  ;;  %v686_v53 = vsel %vm29_vm0, %v662_v51, 0.0  ;;  %v591_v57 = vadd.f32 %v1343_v2, %v568_v54 }
 0x158   :  { %687 = vadd.xlane.f32.xlu2 %v686_v53  ;;  %v430_v55 = vpop.f32.mrf.mxu1 }
 0x159   :  { %v598_v56 = vmul.f32 0.2, %v582_v52  ;;  %v607_v59 = vmul.f32 0.2, %v591_v57 }
 0x15b   :  { %v1407_v58 = vmax.f32 %v582_v52, %v598_v56  ;;  %v1413_v1 = vmax.f32 %v591_v57, %v607_v59 }
 0x15c   :  { %v543_v60 = vpop.f32.mrf.mxu2  ;;  %v570_v61 = vpop.f32.mrf.mxu3 }
 0x15d   :  { %v630_v62 = vpack.c.bf16 %v1407_v58, %v1407_v58  ;;  %v544_v63 = vadd.f32 %v543_v60, %v430_v55  ;;  %v663_v0 = vmul.f32 %v1407_v58, %v1407_v58  ;;  %v571_v3 = vadd.f32 %v570_v61, %v457_v38 }
 0x15e   :  { %v639_v6 = vpack.c.bf16 %v1413_v1, %v1413_v1 }
 0x15f   :  { %647 = vst.msk [vmem:[%s1623_s6 + $0x14] sm:$0xf] %vm641_vm1, %v630_v62  ;;  %v583_v4 = vadd.f32 %v1343_v2, %v544_v63  ;;  %v689_v5 = vsel %vm29_vm0, %v663_v0, 0.0  ;;  %v592_v9 = vadd.f32 %v1343_v2, %v571_v3 }
 0x160   :  { %690 = vadd.xlane.f32.xlu2 %v689_v5  ;;  %v433_v7 = vpop.f32.mrf.mxu1  ;;  %656 = vst.msk [vmem:[%s1623_s6 + $0x38] sm:$0xf] %vm641_vm1, %v639_v6 }
 0x161   :  { %v599_v10 = vmul.f32 0.2, %v583_v4  ;;  %v608_v11 = vmul.f32 0.2, %v592_v9 }
 0x163   :  { %v1428_v12 = vmax.f32 %v583_v4, %v599_v10  ;;  %v1430_v14 = vmax.f32 %v592_v9, %v608_v11 }
 0x164   :  { %v546_v13 = vpop.f32.mrf.mxu2 }
 0x165   :  { %v631_v15 = vpack.c.bf16 %v1428_v12, %v1428_v12  ;;  %v547_v16 = vadd.f32 %v546_v13, %v433_v7  ;;  %v664_v18 = vmul.f32 %v1428_v12, %v1428_v12  ;;  %v640_v19 = vpack.c.bf16 %v1430_v14, %v1430_v14 }
 0x166   :  { %v672_v13 = vmul.f32 %v1413_v1, %v1413_v1 }
 0x167   :  { %648 = vst.msk [vmem:[%s1623_s6 + $0x18] sm:$0xf] %vm641_vm1, %v631_v15  ;;  %v584_v20 = vadd.f32 %v1343_v2, %v547_v16  ;;  %v692_v21 = vsel %vm29_vm0, %v664_v18, 0.0 }
 0x168   :  { %693 = vadd.xlane.f32.xlu0 %v692_v21  ;;  %v436_v22 = vpop.f32.mrf.mxu1  ;;  %657 = vst.msk [vmem:[%s1623_s6 + $0x3c] sm:$0xf] %vm641_vm1, %v640_v19 }
 0x169   :  { %v600_v23 = vmul.f32 0.2, %v584_v20 }
 0x16b   :  { %v1448_v24 = vmax.f32 %v584_v20, %v600_v23 }
 0x16c   :  { %v549_v25 = vpop.f32.mrf.mxu2 }
 0x16d   :  { %v632_v27 = vpack.c.bf16 %v1448_v24, %v1448_v24  ;;  %v550_v28 = vadd.f32 %v549_v25, %v436_v22  ;;  %v665_v29 = vmul.f32 %v1448_v24, %v1448_v24  ;;  %v716_v22 = vsel %vm29_vm0, %v672_v13, 0.0 }
 0x16f   :  { %649 = vst.msk [vmem:[%s1623_s6 + $0x1c] sm:$0xf] %vm641_vm1, %v632_v27  ;;  %v585_v30 = vadd.f32 %v1343_v2, %v550_v28  ;;  %v695_v31 = vsel %vm29_vm0, %v665_v29, 0.0  ;;  %v673_v28 = vmul.f32 %v1430_v14, %v1430_v14 }
 0x170   :  { %696 = vadd.xlane.f32.xlu1 %v695_v31  ;;  %v439_v32 = vpop.f32.mrf.mxu1 }
 0x171   :  { %v601_v33 = vmul.f32 0.2, %v585_v30 }
 0x173   :  { %v1460_v34 = vmax.f32 %v585_v30, %v601_v33 }
 0x174   :  { %v552_v35 = vpop.f32.mrf.mxu2 }
 0x175   :  { %v633_v37 = vpack.c.bf16 %v1460_v34, %v1460_v34  ;;  %v553_v38 = vadd.f32 %v552_v35, %v439_v32  ;;  %v666_v39 = vmul.f32 %v1460_v34, %v1460_v34 }
 0x177   :  { %650 = vst.msk [vmem:[%s1623_s6 + $0x20] sm:$0xf] %vm641_vm1, %v633_v37  ;;  %v586_v40 = vadd.f32 %v1343_v2, %v553_v38  ;;  %v698_v41 = vsel %vm29_vm0, %v666_v39, 0.0 }
 0x178   :  { %699 = vadd.xlane.f32.xlu2 %v698_v41  ;;  %v442_v42 = vpop.f32.mrf.mxu1 }
 0x179   :  { %v602_v43 = vmul.f32 0.2, %v586_v40 }
 0x17b   :  { %v1472_v44 = vmax.f32 %v586_v40, %v602_v43 }
 0x17c   :  { %v555_v45 = vpop.f32.mrf.mxu2 }
 0x17d   :  { %v634_v47 = vpack.c.bf16 %v1472_v44, %v1472_v44  ;;  %v556_v48 = vadd.f32 %v555_v45, %v442_v42  ;;  %v667_v49 = vmul.f32 %v1472_v44, %v1472_v44 }
 0x17f   :  { %651 = vst.msk [vmem:[%s1623_s6 + $0x24] sm:$0xf] %vm641_vm1, %v634_v47  ;;  %v587_v50 = vadd.f32 %v1343_v2, %v556_v48  ;;  %v701_v51 = vsel %vm29_vm0, %v667_v49, 0.0 }
 0x180   :  { %702 = vadd.xlane.f32.xlu0 %v701_v51  ;;  %v445_v52 = vpop.f32.mrf.mxu1 }
 0x181   :  { %v603_v53 = vmul.f32 0.2, %v587_v50 }
 0x183   :  { %v1484_v54 = vmax.f32 %v587_v50, %v603_v53 }
 0x184   :  { %v558_v55 = vpop.f32.mrf.mxu2 }
 0x185   :  { %v635_v56 = vpack.c.bf16 %v1484_v54, %v1484_v54  ;;  %v559_v57 = vadd.f32 %v558_v55, %v445_v52  ;;  %v668_v59 = vmul.f32 %v1484_v54, %v1484_v54 }
 0x187   :  { %652 = vst.msk [vmem:[%s1623_s6 + $0x28] sm:$0xf] %vm641_vm1, %v635_v56  ;;  %v588_v60 = vadd.f32 %v1343_v2, %v559_v57  ;;  %v704_v61 = vsel %vm29_vm0, %v668_v59, 0.0 }
 0x188   :  { %705 = vadd.xlane.f32.xlu1 %v704_v61  ;;  %v448_v63 = vpop.f32.mrf.mxu1 }
 0x189   :  { %v604_v62 = vmul.f32 0.2, %v588_v60 }
 0x18b   :  { %v1496_v0 = vmax.f32 %v588_v60, %v604_v62 }
 0x18c   :  { %v561_v3 = vpop.f32.mrf.mxu2 }
 0x18d   :  { %v636_v4 = vpack.c.bf16 %v1496_v0, %v1496_v0  ;;  %v562_v5 = vadd.f32 %v561_v3, %v448_v63  ;;  %v669_v6 = vmul.f32 %v1496_v0, %v1496_v0 }
 0x18f   :  { %653 = vst.msk [vmem:[%s1623_s6 + $0x2c] sm:$0xf] %vm641_vm1, %v636_v4  ;;  %v589_v7 = vadd.f32 %v1343_v2, %v562_v5  ;;  %v707_v9 = vsel %vm29_vm0, %v669_v6, 0.0 }
 0x190   :  { %708 = vadd.xlane.f32.xlu2 %v707_v9  ;;  %v451_v15 = vpop.f32.mrf.mxu1 }
 0x191   :  { %v605_v10 = vmul.f32 0.2, %v589_v7 }
 0x193   :  { %v1508_v11 = vmax.f32 %v589_v7, %v605_v10 }
 0x194   :  { %v564_v16 = vpop.f32.mrf.mxu2 }
 0x195   :  { %v637_v18 = vpack.c.bf16 %v1508_v11, %v1508_v11  ;;  %v565_v19 = vadd.f32 %v564_v16, %v451_v15  ;;  %v670_v20 = vmul.f32 %v1508_v11, %v1508_v11 }
 0x197   :  { %654 = vst.msk [vmem:[%s1623_s6 + $0x30] sm:$0xf] %vm641_vm1, %v637_v18  ;;  %v590_v21 = vadd.f32 %v1343_v2, %v565_v19  ;;  %v710_v23 = vsel %vm29_vm0, %v670_v20, 0.0  ;;  %v719_v2 = vsel %vm29_vm0, %v673_v28, 0.0 }
 0x198   :  { %717 = vadd.xlane.f32.xlu2 %v716_v22  ;;  %711 = vadd.xlane.f32.xlu0 %v710_v23 }
 0x199   :  { %v606_v25 = vmul.f32 0.2, %v590_v21 }
 0x19b   :  { %v1523_v27 = vmax.f32 %v590_v21, %v606_v25 }
 0x19d   :  { %v638_v29 = vpack.c.bf16 %v1523_v27, %v1523_v27  ;;  %v671_v30 = vmul.f32 %v1523_v27, %v1523_v27 }
 0x19f   :  { %655 = vst.msk [vmem:[%s1623_s6 + $0x34] sm:$0xf] %vm641_vm1, %v638_v29  ;;  %v713_v31 = vsel %vm29_vm0, %v671_v30, 0.0 }
 0x1a0   :  { %720 = vadd.xlane.f32.xlu0 %v719_v2  ;;  %714 = vadd.xlane.f32.xlu1 %v713_v31 }
 0x1ab   :  { %v676_v32 = vpop.xlane.xlu0 %675 }
 0x1ac   :  { %v722_v33 = vmax.f32 %v676_v32, 1e-24 }
 0x1ae   :  { %1107 = vrsqrt.f32 %v722_v33  ;;  %vm744_vm3 = vweird.f32 %v722_v33 }
 0x1b3   :  { %v679_v35 = vpop.xlane.xlu0 %678 }
 0x1b4   :  { %v1108_v37 = vpop.eup %1107  ;;  %v723_v38 = vmax.f32 %v679_v35, 1e-24 }
 0x1b5   :  { %v739_v39 = vmul.f32 %v1108_v37, %v722_v33  ;;  %vm745_vm2 = vweird.f32 %v1108_v37 }
 0x1b6   :  { %1109 = vrsqrt.f32 %v723_v38  ;;  %vm746_vm4 = vmor %vm744_vm3, %vm745_vm2  ;;  %vm754_vm6 = vweird.f32 %v723_v38 }
 0x1b7   :  { %v740_v40 = vmul.f32 %v1108_v37, %v739_v39 }
 0x1b9   :  { %v741_v41 = vmul.f32 0.5, %v740_v40 }
 0x1bb   :  { %v742_v42 = vsub.f32 1.5, %v741_v41  ;;  %v682_v43 = vpop.xlane.xlu1 %681 }
 0x1bc   :  { %v1110_v45 = vpop.eup %1109  ;;  %v724_v47 = vmax.f32 %v682_v43, 1e-24 }
 0x1bd   :  { %v743_v48 = vmul.f32 %v1108_v37, %v742_v42  ;;  %v749_v49 = vmul.f32 %v1110_v45, %v723_v38  ;;  %vm755_vm5 = vweird.f32 %v1110_v45 }
 0x1be   :  { %1111 = vrsqrt.f32 %v724_v47  ;;  %vm756_vm7 = vmor %vm754_vm6, %vm755_vm5  ;;  %vm764_vm9 = vweird.f32 %v724_v47 }
 0x1bf   :  { %v747_v50 = vsel %vm746_vm4, %v1108_v37, %v743_v48  ;;  %v750_v51 = vmul.f32 %v1110_v45, %v749_v49 }
 0x1c0   :  { %v898_v52 = vmul.f32 %v747_v50, %v1346_v8 }
 0x1c1   :  { %v751_v53 = vmul.f32 0.5, %v750_v51 }
 0x1c2   :  { %914 = vst.msk [vmem:[%s1624_s7] sm:$0xff] %vm29_vm0, %v898_v52 }
 0x1c3   :  { %v752_v55 = vsub.f32 1.5, %v751_v53  ;;  %v685_v56 = vpop.xlane.xlu1 %684 }
 0x1c4   :  { %v1112_v57 = vpop.eup %1111  ;;  %v725_v59 = vmax.f32 %v685_v56, 1e-24 }
 0x1c5   :  { %v753_v60 = vmul.f32 %v1110_v45, %v752_v55  ;;  %v759_v61 = vmul.f32 %v1112_v57, %v724_v47  ;;  %vm765_vm8 = vweird.f32 %v1112_v57 }
 0x1c6   :  { %1113 = vrsqrt.f32 %v725_v59  ;;  %vm766_vm10 = vmor %vm764_vm9, %vm765_vm8  ;;  %vm774_vm12 = vweird.f32 %v725_v59 }
 0x1c7   :  { %v757_v62 = vsel %vm756_vm7, %v1110_v45, %v753_v60  ;;  %v760_v63 = vmul.f32 %v1112_v57, %v759_v61 }
 0x1c8   :  { %v899_v8 = vmul.f32 %v757_v62, %v1358_v17 }
 0x1c9   :  { %v761_v3 = vmul.f32 0.5, %v760_v63 }
 0x1ca   :  { %915 = vst.msk [vmem:[%s1624_s7 + $0x8] sm:$0xff] %vm29_vm0, %v899_v8 }
 0x1cb   :  { %v762_v4 = vsub.f32 1.5, %v761_v3  ;;  %v688_v5 = vpop.xlane.xlu2 %687 }
 0x1cc   :  { %v1114_v6 = vpop.eup %1113  ;;  %v726_v7 = vmax.f32 %v688_v5, 1e-24 }
 0x1cd   :  { %v763_v9 = vmul.f32 %v1112_v57, %v762_v4  ;;  %v769_v10 = vmul.f32 %v1114_v6, %v725_v59  ;;  %vm775_vm11 = vweird.f32 %v1114_v6 }
 0x1ce   :  { %1115 = vrsqrt.f32 %v726_v7  ;;  %vm776_vm13 = vmor %vm774_vm12, %vm775_vm11  ;;  %vm784_vm15 = vweird.f32 %v726_v7 }
 0x1cf   :  { %v767_v13 = vsel %vm766_vm10, %v1112_v57, %v763_v9  ;;  %v770_v15 = vmul.f32 %v1114_v6, %v769_v10 }
 0x1d0   :  { %v900_v17 = vmul.f32 %v767_v13, %v1370_v26 }
 0x1d1   :  { %v771_v16 = vmul.f32 0.5, %v770_v15 }
 0x1d2   :  { %916 = vst.msk [vmem:[%s1624_s7 + $0x10] sm:$0xff] %vm29_vm0, %v900_v17 }
 0x1d3   :  { %v772_v18 = vsub.f32 1.5, %v771_v16  ;;  %v691_v19 = vpop.xlane.xlu2 %690 }
 0x1d4   :  { %v1116_v20 = vpop.eup %1115  ;;  %v727_v21 = vmax.f32 %v691_v19, 1e-24 }
 0x1d5   :  { %v773_v22 = vmul.f32 %v1114_v6, %v772_v18  ;;  %v779_v23 = vmul.f32 %v1116_v20, %v726_v7  ;;  %vm785_vm14 = vweird.f32 %v1116_v20 }
 0x1d6   :  { %1117 = vrsqrt.f32 %v727_v21  ;;  %vm786_vm1 = vmor %vm784_vm15, %vm785_vm14  ;;  %vm794_vm3 = vweird.f32 %v727_v21 }
 0x1d7   :  { %v777_v25 = vsel %vm776_vm13, %v1114_v6, %v773_v22  ;;  %v780_v28 = vmul.f32 %v1116_v20, %v779_v23 }
 0x1d8   :  { %v901_v26 = vmul.f32 %v777_v25, %v1382_v36 }
 0x1d9   :  { %v781_v29 = vmul.f32 0.5, %v780_v28 }
 0x1da   :  { %917 = vst.msk [vmem:[%s1624_s7 + $0x18] sm:$0xff] %vm29_vm0, %v901_v26 }
 0x1db   :  { %v782_v30 = vsub.f32 1.5, %v781_v29  ;;  %v694_v2 = vpop.xlane.xlu0 %693 }
 0x1dc   :  { %v1118_v31 = vpop.eup %1117  ;;  %v728_v32 = vmax.f32 %v694_v2, 1e-24 }
 0x1dd   :  { %v783_v33 = vmul.f32 %v1116_v20, %v782_v30  ;;  %v789_v35 = vmul.f32 %v1118_v31, %v727_v21  ;;  %vm795_vm2 = vweird.f32 %v1118_v31 }
 0x1de   :  { %1119 = vrsqrt.f32 %v728_v32  ;;  %vm796_vm4 = vmor %vm794_vm3, %vm795_vm2  ;;  %vm804_vm6 = vweird.f32 %v728_v32 }
 0x1df   :  { %v787_v37 = vsel %vm786_vm1, %v1116_v20, %v783_v33  ;;  %v790_v38 = vmul.f32 %v1118_v31, %v789_v35 }
 0x1e0   :  { %v902_v36 = vmul.f32 %v787_v37, %v1394_v46 }
 0x1e1   :  { %v791_v39 = vmul.f32 0.5, %v790_v38 }
 0x1e2   :  { %918 = vst.msk [vmem:[%s1624_s7 + $0x20] sm:$0xff] %vm29_vm0, %v902_v36 }
 0x1e3   :  { %v792_v40 = vsub.f32 1.5, %v791_v39  ;;  %v697_v41 = vpop.xlane.xlu1 %696 }
 0x1e4   :  { %v1120_v42 = vpop.eup %1119  ;;  %v729_v43 = vmax.f32 %v697_v41, 1e-24 }
 0x1e5   :  { %v793_v45 = vmul.f32 %v1118_v31, %v792_v40  ;;  %v799_v47 = vmul.f32 %v1120_v42, %v728_v32  ;;  %vm805_vm5 = vweird.f32 %v1120_v42 }
 0x1e6   :  { %1121 = vrsqrt.f32 %v729_v43  ;;  %vm806_vm7 = vmor %vm804_vm6, %vm805_vm5  ;;  %vm814_vm9 = vweird.f32 %v729_v43 }
 0x1e7   :  { %v797_v48 = vsel %vm796_vm4, %v1118_v31, %v793_v45  ;;  %v800_v49 = vmul.f32 %v1120_v42, %v799_v47 }
 0x1e8   :  { %v903_v46 = vmul.f32 %v797_v48, %v1407_v58 }
 0x1e9   :  { %v801_v50 = vmul.f32 0.5, %v800_v49 }
 0x1ea   :  { %919 = vst.msk [vmem:[%s1624_s7 + $0x28] sm:$0xff] %vm29_vm0, %v903_v46 }
 0x1eb   :  { %v802_v51 = vsub.f32 1.5, %v801_v50  ;;  %v700_v52 = vpop.xlane.xlu2 %699 }
 0x1ec   :  { %v1122_v53 = vpop.eup %1121  ;;  %v730_v55 = vmax.f32 %v700_v52, 1e-24 }
 0x1ed   :  { %v803_v56 = vmul.f32 %v1120_v42, %v802_v51  ;;  %v809_v57 = vmul.f32 %v1122_v53, %v729_v43  ;;  %vm815_vm8 = vweird.f32 %v1122_v53 }
 0x1ee   :  { %1123 = vrsqrt.f32 %v730_v55  ;;  %vm816_vm10 = vmor %vm814_vm9, %vm815_vm8  ;;  %vm824_vm12 = vweird.f32 %v730_v55 }
 0x1ef   :  { %v807_v59 = vsel %vm806_vm7, %v1120_v42, %v803_v56  ;;  %v810_v60 = vmul.f32 %v1122_v53, %v809_v57 }
 0x1f0   :  { %v904_v58 = vmul.f32 %v807_v59, %v1428_v12 }
 0x1f1   :  { %v811_v61 = vmul.f32 0.5, %v810_v60 }
 0x1f2   :  { %920 = vst.msk [vmem:[%s1624_s7 + $0x30] sm:$0xff] %vm29_vm0, %v904_v58 }
 0x1f3   :  { %v812_v62 = vsub.f32 1.5, %v811_v61  ;;  %v703_v63 = vpop.xlane.xlu0 %702 }
 0x1f4   :  { %v1124_v8 = vpop.eup %1123  ;;  %v731_v3 = vmax.f32 %v703_v63, 1e-24 }
 0x1f5   :  { %v813_v4 = vmul.f32 %v1122_v53, %v812_v62  ;;  %v819_v5 = vmul.f32 %v1124_v8, %v730_v55  ;;  %vm825_vm11 = vweird.f32 %v1124_v8 }
 0x1f6   :  { %1125 = vrsqrt.f32 %v731_v3  ;;  %vm826_vm13 = vmor %vm824_vm12, %vm825_vm11  ;;  %vm834_vm15 = vweird.f32 %v731_v3 }
 0x1f7   :  { %v817_v6 = vsel %vm816_vm10, %v1122_v53, %v813_v4  ;;  %v820_v7 = vmul.f32 %v1124_v8, %v819_v5 }
 0x1f8   :  { %v905_v12 = vmul.f32 %v817_v6, %v1448_v24 }
 0x1f9   :  { %v821_v9 = vmul.f32 0.5, %v820_v7 }
 0x1fa   :  { %921 = vst.msk [vmem:[%s1624_s7 + $0x38] sm:$0xff] %vm29_vm0, %v905_v12 }
 0x1fb   :  { %v822_v10 = vsub.f32 1.5, %v821_v9  ;;  %v706_v13 = vpop.xlane.xlu1 %705 }
 0x1fc   :  { %v1126_v15 = vpop.eup %1125  ;;  %v732_v17 = vmax.f32 %v706_v13, 1e-24 }
 0x1fd   :  { %v823_v16 = vmul.f32 %v1124_v8, %v822_v10  ;;  %v829_v18 = vmul.f32 %v1126_v15, %v731_v3  ;;  %vm835_vm14 = vweird.f32 %v1126_v15 }
 0x1fe   :  { %1127 = vrsqrt.f32 %v732_v17  ;;  %vm836_vm1 = vmor %vm834_vm15, %vm835_vm14  ;;  %vm844_vm3 = vweird.f32 %v732_v17 }
 0x1ff   :  { %v827_v19 = vsel %vm826_vm13, %v1124_v8, %v823_v16  ;;  %v830_v20 = vmul.f32 %v1126_v15, %v829_v18 }
 0x200   :  { %v906_v24 = vmul.f32 %v827_v19, %v1460_v34 }
 0x201   :  { %v831_v21 = vmul.f32 0.5, %v830_v20 }
 0x202   :  { %922 = vst.msk [vmem:[%s1624_s7 + $0x40] sm:$0xff] %vm29_vm0, %v906_v24 }
 0x203   :  { %v832_v22 = vsub.f32 1.5, %v831_v21  ;;  %v709_v23 = vpop.xlane.xlu2 %708 }
 0x204   :  { %v1128_v25 = vpop.eup %1127  ;;  %v733_v28 = vmax.f32 %v709_v23, 1e-24 }
 0x205   :  { %v833_v26 = vmul.f32 %v1126_v15, %v832_v22  ;;  %v839_v29 = vmul.f32 %v1128_v25, %v732_v17  ;;  %vm845_vm2 = vweird.f32 %v1128_v25 }
 0x206   :  { %1129 = vrsqrt.f32 %v733_v28  ;;  %vm846_vm4 = vmor %vm844_vm3, %vm845_vm2  ;;  %vm854_vm6 = vweird.f32 %v733_v28 }
 0x207   :  { %v837_v30 = vsel %vm836_vm1, %v1126_v15, %v833_v26  ;;  %v840_v2 = vmul.f32 %v1128_v25, %v839_v29 }
 0x208   :  { %v907_v34 = vmul.f32 %v837_v30, %v1472_v44 }
 0x209   :  { %v841_v31 = vmul.f32 0.5, %v840_v2 }
 0x20a   :  { %923 = vst.msk [vmem:[%s1624_s7 + $0x48] sm:$0xff] %vm29_vm0, %v907_v34 }
 0x20b   :  { %v842_v32 = vsub.f32 1.5, %v841_v31  ;;  %v718_v33 = vpop.xlane.xlu2 %717  ;;  %v712_v35 = vpop.xlane.xlu0 %711 }
 0x20c   :  { %v1130_v37 = vpop.eup %1129  ;;  %v736_v38 = vmax.f32 %v718_v33, 1e-24  ;;  %v734_v36 = vmax.f32 %v712_v35, 1e-24 }
 0x20d   :  { %v843_v39 = vmul.f32 %v1128_v25, %v842_v32  ;;  %v849_v40 = vmul.f32 %v1130_v37, %v733_v28  ;;  %vm855_vm5 = vweird.f32 %v1130_v37 }
 0x20e   :  { %1131 = vrsqrt.f32 %v736_v38  ;;  %vm856_vm7 = vmor %vm854_vm6, %vm855_vm5  ;;  %vm884_vm10 = vweird.f32 %v736_v38  ;;  %vm864_vm12 = vweird.f32 %v734_v36 }
 0x20f   :  { %v847_v41 = vsel %vm846_vm4, %v1128_v25, %v843_v39  ;;  %v850_v44 = vmul.f32 %v1130_v37, %v849_v40  ;;  %1133 = vrsqrt.f32 %v734_v36 }
 0x210   :  { %v908_v42 = vmul.f32 %v847_v41, %v1484_v54 }
 0x211   :  { %v851_v43 = vmul.f32 0.5, %v850_v44 }
 0x212   :  { %924 = vst.msk [vmem:[%s1624_s7 + $0x50] sm:$0xff] %vm29_vm0, %v908_v42 }
 0x213   :  { %v852_v45 = vsub.f32 1.5, %v851_v43  ;;  %v721_v47 = vpop.xlane.xlu0 %720  ;;  %v715_v48 = vpop.xlane.xlu1 %714 }
 0x214   :  { %v1132_v49 = vpop.eup %1131  ;;  %v737_v46 = vmax.f32 %v721_v47, 1e-24  ;;  %v735_v50 = vmax.f32 %v715_v48, 1e-24 }
 0x215   :  { %v1134_v51 = vpop.eup %1133  ;;  %v853_v52 = vmul.f32 %v1130_v37, %v852_v45  ;;  %v879_v53 = vmul.f32 %v1132_v49, %v736_v38  ;;  %vm885_vm8 = vweird.f32 %v1132_v49 }
 0x216   :  { %v859_v55 = vmul.f32 %v1134_v51, %v734_v36  ;;  %1135 = vrsqrt.f32 %v737_v46  ;;  %vm865_vm9 = vweird.f32 %v1134_v51  ;;  %vm886_vm11 = vmor %vm884_vm10, %vm885_vm8  ;;  %vm894_vm1 = vweird.f32 %v737_v46 }
 0x217   :  { %v857_v54 = vsel %vm856_vm7, %v1130_v37, %v853_v52  ;;  %v880_v56 = vmul.f32 %v1132_v49, %v879_v53  ;;  %1137 = vrsqrt.f32 %v735_v50  ;;  %vm866_vm13 = vmor %vm864_vm12, %vm865_vm9  ;;  %vm874_vm3 = vweird.f32 %v735_v50 }
 0x218   :  { %v909_v57 = vmul.f32 %v857_v54, %v1496_v0  ;;  %v860_v59 = vmul.f32 %v1134_v51, %v859_v55 }
 0x219   :  { %v881_v60 = vmul.f32 0.5, %v880_v56 }
 0x21a   :  { %925 = vst.msk [vmem:[%s1624_s7 + $0x58] sm:$0xff] %vm29_vm0, %v909_v57  ;;  %v861_v58 = vmul.f32 0.5, %v860_v59 }
 0x21b   :  { %v882_v61 = vsub.f32 1.5, %v881_v60 }
 0x21c   :  { %v1136_v62 = vpop.eup %1135  ;;  %v862_v63 = vsub.f32 1.5, %v861_v58 }
 0x21d   :  { %v1138_v8 = vpop.eup %1137  ;;  %v883_v3 = vmul.f32 %v1132_v49, %v882_v61  ;;  %v889_v4 = vmul.f32 %v1136_v62, %v737_v46  ;;  %vm895_vm14 = vweird.f32 %v1136_v62 }
 0x21e   :  { %v863_v5 = vmul.f32 %v1134_v51, %v862_v63  ;;  %v869_v0 = vmul.f32 %v1138_v8, %v735_v50  ;;  %vm875_vm15 = vweird.f32 %v1138_v8  ;;  %vm896_vm2 = vmor %vm894_vm1, %vm895_vm14 }
 0x21f   :  { %v887_v6 = vsel %vm886_vm11, %v1132_v49, %v883_v3  ;;  %v890_v7 = vmul.f32 %v1136_v62, %v889_v4  ;;  %vm876_vm4 = vmor %vm874_vm3, %vm875_vm15 }
 0x220   :  { %v912_v12 = vmul.f32 %v887_v6, %v1413_v1  ;;  %v867_v9 = vsel %vm866_vm13, %v1134_v51, %v863_v5  ;;  %v870_v10 = vmul.f32 %v1138_v8, %v869_v0 }
 0x221   :  { %v910_v13 = vmul.f32 %v867_v9, %v1508_v11  ;;  %v891_v15 = vmul.f32 0.5, %v890_v7 }
 0x222   :  { %928 = vst.msk [vmem:[%s1624_s7 + $0x70] sm:$0xff] %vm29_vm0, %v912_v12  ;;  %v871_v17 = vmul.f32 0.5, %v870_v10 }
 0x223   :  { %926 = vst.msk [vmem:[%s1624_s7 + $0x60] sm:$0xff] %vm29_vm0, %v910_v13  ;;  %v892_v16 = vsub.f32 1.5, %v891_v15 }
 0x224   :  { %v872_v18 = vsub.f32 1.5, %v871_v17 }
 0x225   :  { %v893_v1 = vmul.f32 %v1136_v62, %v892_v16 }
 0x226   :  { %v873_v11 = vmul.f32 %v1138_v8, %v872_v18 }
 0x227   :  { %v897_v19 = vsel %vm896_vm2, %v1136_v62, %v893_v1 }
 0x228   :  { %v913_v20 = vmul.f32 %v897_v19, %v1430_v14  ;;  %v877_v24 = vsel %vm876_vm4, %v1138_v8, %v873_v11 }
 0x229   :  { %v911_v21 = vmul.f32 %v877_v24, %v1523_v27 }
 0x22a   :  { %929 = vst.msk [vmem:[%s1624_s7 + $0x78] sm:$0xff] %vm29_vm0, %v913_v20 }
 0x22b   :  { %927 = vst.msk [vmem:[%s1624_s7 + $0x68] sm:$0xff] %vm29_vm0, %v911_v21 }

// kernel: ngcf_forward.5
= control target key start
LH: loop header
LB: loop body
LE: loop exit
PB: predicated region body
PF: predicated region fallthrough
CT: control target
= control target key end

     0   :  { %s1619_s0 = inlined_call_operand.vmem [shape: bf16[128,128], index: 0, kind: input, shape index: {}]   ;;  %s1620_s1 = inlined_call_operand.vmem [shape: bf16[128,32], index: 1, kind: input, shape index: {}, may-alias: {1,2}]   ;;  %s1621_s2 = inlined_call_operand.vmem [shape: bf16[128,32], index: 2, kind: input, shape index: {}, may-alias: {1,2}]   ;;  %s1622_s3 = inlined_call_operand.vmem [shape: f32[32,32], index: 3, kind: input, shape index: {}]   ;;  %s1623_s4 = inlined_call_operand.vmem [shape: f32[32,32], index: 4, kind: input, shape index: {}]   ;;  %s1624_s5 = inlined_call_operand.vmem [shape: f32[1,32], index: 5, kind: input, shape index: {}]   ;;  %s1625_s6 = inlined_call_operand.hbm [shape: bf16[128,32], index: 6, kind: output, shape index: {0}]   ;;  %s1626_s7 = inlined_call_operand.vmem [shape: f32[128,32], index: 7, kind: output, shape index: {1}]  }
   0x1   :  { %v1064_v0 = vld [vmem:[%s1620_s1 + $0x38] sm:$0xff]  ;;  %v1063_v1 = vld [vmem:[%s1620_s1 + $0x30] sm:$0xff] }
   0x2   :  { %191 = vmatpush.bf16.msra.mxu0 %v1064_v0  ;;  %1104 = vmatpush.bf16.msra.mxu3 %v1064_v0 }
   0x3   :  { %13 = vsyncpa [#allocation4], 0  ;;  %v1062_v2 = vld [vmem:[%s1620_s1 + $0x28] sm:$0xff]  ;;  %v1061_v3 = vld [vmem:[%s1620_s1 + $0x20] sm:$0xff]  ;;  %vm30_vm0 = vcmask 261120   ;;  %v1183_v14 = vmov 0.0  }
   0x4   :  { %v1060_v4 = vld [vmem:[%s1620_s1 + $0x18] sm:$0xff]  ;;  %v1059_v5 = vld [vmem:[%s1620_s1 + $0x10] sm:$0xff]  ;;  %v1058_v6 = vld [vmem:[%s1620_s1 + $0x8] sm:$0xff]  ;;  %31 = vst.msk [vmem:[#allocation2] sm:$0xff] %vm30_vm0, %v1183_v14  ;;  %vm642_vm1 = vcmask 257024   ;;  %s937_s17 = sshll.u32 %s1625_s6, 4  ;;  %s938_s17 = int_to_ptr.hbm [resolvable:$true] %s937_s17 }
   0x5   :  { %v1057_v7 = vld [vmem:[%s1620_s1] sm:$0xff]  ;;  %v1055_v9 = vld [vmem:[%s1619_s0 + $0x30] sm:$0xff]  ;;  %v1050_v10 = vld [vmem:[%s1619_s0 + $0x8] sm:$0xff]  ;;  %32 = vst.msk [vmem:[#allocation2 + $0x8] sm:$0xff] %vm30_vm0, %v1183_v14  ;;  %s1185_s18 = smov 64   ;;  %s1186_s19 = smov 4  }
   0x6   :  { %192 = vmatpush.bf16.msra.mxu0 %v1063_v1  ;;  %1105 = vmatpush.bf16.msra.mxu3 %v1063_v1  ;;  %v1049_v8 = vld [vmem:[%s1619_s0] sm:$0xff]  ;;  %v1056_v11 = vld [vmem:[%s1619_s0 + $0x38] sm:$0xff]  ;;  %v1051_v12 = vld [vmem:[%s1619_s0 + $0x10] sm:$0xff]  ;;  %33 = vst.msk [vmem:[#allocation2 + $0x10] sm:$0xff] %vm30_vm0, %v1183_v14 }
   0x7   :  { %v1052_v13 = vld [vmem:[%s1619_s0 + $0x18] sm:$0xff]  ;;  %34 = vst.msk [vmem:[#allocation2 + $0x18] sm:$0xff] %vm30_vm0, %v1183_v14  ;;  %v1053_v15 = vld [vmem:[%s1619_s0 + $0x20] sm:$0xff]  ;;  %v1054_v16 = vld [vmem:[%s1619_s0 + $0x28] sm:$0xff] }
   0x8   :  { %35 = vst.msk [vmem:[#allocation2 + $0x20] sm:$0xff] %vm30_vm0, %v1183_v14  ;;  %v327_v17 = vld [vmem:[%s1622_s3 + $0x18] sm:$0xff]  ;;  %v326_v19 = vld [vmem:[%s1622_s3 + $0x10] sm:$0xff]  ;;  %v325_v21 = vld [vmem:[%s1622_s3 + $0x8] sm:$0xff] }
   0x9   :  { %36 = vst.msk [vmem:[#allocation2 + $0x28] sm:$0xff] %vm30_vm0, %v1183_v14  ;;  %v347_v18 = vld [vmem:[%s1623_s4 + $0x18] sm:$0xff]  ;;  %521 = vmatpush.msra.mxu2 %v327_v17  ;;  %v346_v20 = vld [vmem:[%s1623_s4 + $0x10] sm:$0xff]  ;;  %v345_v22 = vld [vmem:[%s1623_s4 + $0x8] sm:$0xff] }
   0xa   :  { %193 = vmatpush.bf16.msra.mxu0 %v1062_v2  ;;  %1106 = vmatpush.bf16.msra.mxu3 %v1062_v2  ;;  %37 = vst.msk [vmem:[#allocation2 + $0x30] sm:$0xff] %vm30_vm0, %v1183_v14  ;;  %v324_v23 = vld [vmem:[%s1622_s3] sm:$0xff]  ;;  %v1097_v47 = vld [vmem:[%s1621_s2 + $0x8] sm:$0xff]   ;;  %v1103_v56 = vld [vmem:[%s1621_s2 + $0x38] sm:$0xff]  }
   0xb   :  { %38 = vst.msk [vmem:[#allocation2 + $0x38] sm:$0xff] %vm30_vm0, %v1183_v14  ;;  %408 = vmatpush.msra.mxu1 %v347_v18  ;;  %522 = vmatpush.msra.mxu2 %v326_v19  ;;  %v344_v24 = vld [vmem:[%s1623_s4] sm:$0xff]  ;;  %v1071_v51 = vunpack.c.l.bf16 %v1097_v47  ;;  %v1095_v59 = vunpack.c.l.bf16 %v1103_v56  ;;  %v1072_v62 = vunpack.c.h.bf16 %v1097_v47 }
   0xc   :  { %39 = vst.msk [vmem:[#allocation2 + $0x40] sm:$0xff] %vm30_vm0, %v1183_v14  ;;  %v47_v25 = vld [vmem:[#allocation2] sm:$0xff]  ;;  %v48_v30 = vld [vmem:[#allocation2 + $0x8] sm:$0xff] }
   0xd   :  { %40 = vst.msk [vmem:[#allocation2 + $0x48] sm:$0xff] %vm30_vm0, %v1183_v14  ;;  %409 = vmatpush.msra.mxu1 %v346_v20  ;;  %523 = vmatpush.msra.mxu2 %v325_v21  ;;  %v1066_v28 = vld [vmem:[%s1621_s2] sm:$0xff]   ;;  %v49_v39 = vld [vmem:[#allocation2 + $0x10] sm:$0xff] }
   0xe   :  { %194 = vmatpush.bf16.msra.mxu0 %v1061_v3  ;;  %1107 = vmatpush.bf16.msra.mxu3 %v1061_v3  ;;  %41 = vst.msk [vmem:[#allocation2 + $0x50] sm:$0xff] %vm30_vm0, %v1183_v14  ;;  %v1067_v32 = vunpack.c.l.bf16 %v1066_v28  ;;  %v1068_v41 = vunpack.c.h.bf16 %v1066_v28  ;;  %v50_v49 = vld [vmem:[#allocation2 + $0x18] sm:$0xff] }
   0xf   :  { %42 = vst.msk [vmem:[#allocation2 + $0x58] sm:$0xff] %vm30_vm0, %v1183_v14  ;;  %410 = vmatpush.msra.mxu1 %v345_v22  ;;  %524 = vmatpush.msra.mxu2 %v324_v23  ;;  %v51_v60 = vld [vmem:[#allocation2 + $0x20] sm:$0xff] }
  0x10   :  { %43 = vst.msk [vmem:[#allocation2 + $0x60] sm:$0xff] %vm30_vm0, %v1183_v14 }
  0x11   :  { %44 = vst.msk [vmem:[#allocation2 + $0x68] sm:$0xff] %vm30_vm0, %v1183_v14  ;;  %411 = vmatpush.msra.mxu1 %v344_v24 }
  0x12   :  { %195 = vmatpush.bf16.msra.mxu0 %v1060_v4  ;;  %1108 = vmatpush.bf16.msra.mxu3 %v1060_v4  ;;  %45 = vst.msk [vmem:[#allocation2 + $0x70] sm:$0xff] %vm30_vm0, %v1183_v14 }
  0x13   :  { %46 = vst.msk [vmem:[#allocation2 + $0x78] sm:$0xff] %vm30_vm0, %v1183_v14 }
  0x16   :  { %196 = vmatpush.bf16.msra.mxu0 %v1059_v5  ;;  %1109 = vmatpush.bf16.msra.mxu3 %v1059_v5 }
  0x17   :  { %v59_v29 = vld [vmem:[#allocation2 + $0x60] sm:$0xff] }
  0x18   :  { %v60_v38 = vld [vmem:[#allocation2 + $0x68] sm:$0xff] }
  0x19   :  { %v61_v48 = vld [vmem:[#allocation2 + $0x70] sm:$0xff] }
  0x1a   :  { %197 = vmatpush.bf16.msra.mxu0 %v1058_v6  ;;  %1110 = vmatpush.bf16.msra.mxu3 %v1058_v6  ;;  %v62_v58 = vld [vmem:[#allocation2 + $0x78] sm:$0xff]  ;;  %v1098_v6 = vld [vmem:[%s1621_s2 + $0x10] sm:$0xff]  }
  0x1e   :  { %198 = vmatpush.bf16.msra.mxu0 %v1057_v7  ;;  %1111 = vmatpush.bf16.msra.mxu3 %v1057_v7  ;;  %v1096_v7 = vunpack.c.h.bf16 %v1103_v56 }
  0x21   :  { %199 = vmatmul.bf16.vlgmr.msra.gmra.mxu0 %v1049_v8  ;;  %229 = vmatmul.bf16.vlgmr.msra.gmra.mxu3 %v1055_v9  ;;  %v52_v8 = vld [vmem:[#allocation2 + $0x28] sm:$0xff]  ;;  %v1075_v9 = vunpack.c.l.bf16 %v1098_v6 }
  0x22   :  { %1112 = vmatpush.msrb.mxu3 %v347_v18 }
  0x24   :  { %1113 = vmatpush.msrb.mxu3 %v346_v20 }
  0x26   :  { %1114 = vmatpush.msrb.mxu3 %v345_v22  ;;  %v1099_v22 = vld [vmem:[%s1621_s2 + $0x18] sm:$0xff]  }
  0x28   :  { %1115 = vmatpush.msrb.mxu3 %v344_v24  ;;  %v1079_v24 = vunpack.c.l.bf16 %v1099_v22 }
  0x2a   :  { %1116 = vmatpush.msra.mxu3 %v327_v17  ;;  %v1076_v17 = vunpack.c.h.bf16 %v1098_v6 }
  0x2c   :  { %1117 = vmatpush.msra.mxu3 %v326_v19 }
  0x2e   :  { %1118 = vmatpush.msra.mxu3 %v325_v21 }
  0x30   :  { %1119 = vmatpush.msra.mxu3 %v324_v23  ;;  %v54_v23 = vld [vmem:[#allocation2 + $0x38] sm:$0xff] }
  0x31   :  { %204 = vmatmul.bf16.gmra.mxu0 %v1050_v10  ;;  %234 = vmatmul.bf16.gmra.mxu3 %v1056_v11 }
  0x41   :  { %209 = vmatmul.bf16.gmra.mxu0 %v1051_v12 }
  0x51   :  { %214 = vmatmul.bf16.gmra.mxu0 %v1052_v13 }
  0x61   :  { %219 = vmatmul.bf16.gmra.mxu0 %v1053_v15 }
  0x71   :  { %224 = vmatmul.bf16.gmra.mxu0 %v1054_v16  ;;  %v53_v16 = vld [vmem:[#allocation2 + $0x30] sm:$0xff] }
  0x9e   :  { %v200_v26 = vpop.f32.mrf.mxu0 }
  0x9f   :  { %v240_v27 = vadd.f32 %v200_v26, %v47_v25 }
  0xa1   :  { %257 = vst.msk [vmem:[#allocation2] sm:$0xff] %vm30_vm0, %v240_v27 }
  0xa4   :  { %v230_v31 = vpop.f32.mrf.mxu3 }
  0xa5   :  { %v252_v33 = vadd.f32 %v230_v31, %v59_v29  ;;  %v55_v29 = vld [vmem:[#allocation2 + $0x40] sm:$0xff] }
  0xa6   :  { %v202_v34 = vpop.f32.mrf.mxu0 }
  0xa7   :  { %v241_v35 = vadd.f32 %v202_v34, %v48_v30  ;;  %269 = vst.msk [vmem:[#allocation2 + $0x60] sm:$0xff] %vm30_vm0, %v252_v33  ;;  %v1080_v30 = vunpack.c.h.bf16 %v1099_v22 }
  0xa8   :  { %v276_v36 = vld [vmem:[#allocation2] sm:$0xff] }
  0xa9   :  { %258 = vst.msk [vmem:[#allocation2 + $0x8] sm:$0xff] %vm30_vm0, %v241_v35  ;;  %v328_v37 = vmul.f32 %v1067_v32, %v276_v36  ;;  %1033 = vmatmul.msk.f32.vlgmr.msra.gmra.mxu2 %vm30_vm0, %v276_v36  ;;  %v1100_v35 = vld [vmem:[%s1621_s2 + $0x20] sm:$0xff]   ;;  %v56_v36 = vld [vmem:[#allocation2 + $0x48] sm:$0xff] }
  0xab   :  { %1017 = vmatmul.msk.f32.vlgmr.msra.gmra.mxu1 %vm30_vm0, %v328_v37  ;;  %v1083_v37 = vunpack.c.l.bf16 %v1100_v35 }
  0xac   :  { %v232_v40 = vpop.f32.mrf.mxu3 }
  0xad   :  { %v253_v42 = vadd.f32 %v232_v40, %v60_v38 }
  0xae   :  { %v205_v43 = vpop.f32.mrf.mxu0 }
  0xaf   :  { %v242_v44 = vadd.f32 %v205_v43, %v49_v39  ;;  %270 = vst.msk [vmem:[#allocation2 + $0x68] sm:$0xff] %vm30_vm0, %v253_v42  ;;  %v57_v42 = vld [vmem:[#allocation2 + $0x50] sm:$0xff]  ;;  %v1084_v43 = vunpack.c.h.bf16 %v1100_v35 }
  0xb0   :  { %v277_v45 = vld [vmem:[#allocation2 + $0x8] sm:$0xff] }
  0xb1   :  { %259 = vst.msk [vmem:[#allocation2 + $0x10] sm:$0xff] %vm30_vm0, %v242_v44  ;;  %v329_v46 = vmul.f32 %v1068_v41, %v277_v45  ;;  %1034 = vmatmul.msk.f32.gmra.mxu2 %vm30_vm0, %v277_v45 }
  0xb3   :  { %1018 = vmatmul.msk.f32.gmra.mxu1 %vm30_vm0, %v329_v46 }
  0xb4   :  { %v235_v50 = vpop.f32.mrf.mxu3 }
  0xb5   :  { %v254_v52 = vadd.f32 %v235_v50, %v61_v48  ;;  %v1101_v48 = vld [vmem:[%s1621_s2 + $0x28] sm:$0xff]  }
  0xb6   :  { %v207_v53 = vpop.f32.mrf.mxu0  ;;  %v1087_v50 = vunpack.c.l.bf16 %v1101_v48 }
  0xb7   :  { %v243_v54 = vadd.f32 %v207_v53, %v50_v49  ;;  %271 = vst.msk [vmem:[#allocation2 + $0x70] sm:$0xff] %vm30_vm0, %v254_v52  ;;  %v58_v49 = vld [vmem:[#allocation2 + $0x58] sm:$0xff] }
  0xb8   :  { %v278_v55 = vld [vmem:[#allocation2 + $0x10] sm:$0xff] }
  0xb9   :  { %260 = vst.msk [vmem:[#allocation2 + $0x18] sm:$0xff] %vm30_vm0, %v243_v54  ;;  %v330_v57 = vmul.f32 %v1071_v51, %v278_v55  ;;  %1035 = vmatmul.msk.f32.gmra.mxu2 %vm30_vm0, %v278_v55  ;;  %v1088_v55 = vunpack.c.h.bf16 %v1101_v48 }
  0xbb   :  { %1019 = vmatmul.msk.f32.gmra.mxu1 %vm30_vm0, %v330_v57 }
  0xbc   :  { %v237_v61 = vpop.f32.mrf.mxu3 }
  0xbd   :  { %v255_v63 = vadd.f32 %v237_v61, %v62_v58  ;;  %v1102_v58 = vld [vmem:[%s1621_s2 + $0x30] sm:$0xff]   ;;  %s1184_s2 = smov [#allocation3]  }
  0xbe   :  { %v210_v0 = vpop.f32.mrf.mxu0  ;;  %v290_v1 = vld [vmem:[#allocation2 + $0x70] sm:$0xff] }
  0xbf   :  { %v244_v2 = vadd.f32 %v210_v0, %v51_v60  ;;  %272 = vst.msk [vmem:[#allocation2 + $0x78] sm:$0xff] %vm30_vm0, %v255_v63  ;;  %v342_v3 = vmul.f32 %v1095_v59, %v290_v1  ;;  %v1091_v59 = vunpack.c.l.bf16 %v1102_v58  ;;  %v288_v60 = vld [vmem:[#allocation2 + $0x60] sm:$0xff]  ;;  %v289_v63 = vld [vmem:[#allocation2 + $0x68] sm:$0xff] }
  0xc0   :  { %v279_v4 = vld [vmem:[#allocation2 + $0x18] sm:$0xff] }
  0xc1   :  { %261 = vst.msk [vmem:[#allocation2 + $0x20] sm:$0xff] %vm30_vm0, %v244_v2  ;;  %v331_v5 = vmul.f32 %v1072_v62, %v279_v4  ;;  %1036 = vmatmul.msk.f32.gmra.mxu2 %vm30_vm0, %v279_v4  ;;  %1031 = vmatmul.msk.f32.vlgmr.msrb.gmra.mxu3 %vm30_vm0, %v342_v3  ;;  %v340_v61 = vmul.f32 %v1091_v59, %v288_v60  ;;  %v1092_v62 = vunpack.c.h.bf16 %v1102_v58  ;;  %v1390_v2 = vld [vmem:[%s1624_s5] ss:$0 sm:$0xff]  ;;  %s935_s5 = sshll.u32 %s1184_s2, 4  ;;  %s936_s5 = int_to_ptr.vmem [resolvable:$true] %s935_s5 }
  0xc3   :  { %1020 = vmatmul.msk.f32.gmra.mxu1 %vm30_vm0, %v331_v5  ;;  %v341_v0 = vmul.f32 %v1092_v62, %v289_v63 }
  0xc6   :  { %v212_v10 = vpop.f32.mrf.mxu0  ;;  %v291_v11 = vld [vmem:[#allocation2 + $0x78] sm:$0xff] }
  0xc7   :  { %v245_v12 = vadd.f32 %v212_v10, %v52_v8  ;;  %v343_v13 = vmul.f32 %v1096_v7, %v291_v11 }
  0xc8   :  { %v280_v14 = vld [vmem:[#allocation2 + $0x20] sm:$0xff] }
  0xc9   :  { %262 = vst.msk [vmem:[#allocation2 + $0x28] sm:$0xff] %vm30_vm0, %v245_v12  ;;  %v332_v15 = vmul.f32 %v1075_v9, %v280_v14  ;;  %1037 = vmatmul.msk.f32.gmra.mxu2 %vm30_vm0, %v280_v14  ;;  %1032 = vmatmul.msk.f32.gmra.mxu3 %vm30_vm0, %v343_v13 }
  0xcb   :  { %1021 = vmatmul.msk.f32.gmra.mxu1 %vm30_vm0, %v332_v15 }
  0xce   :  { %v215_v18 = vpop.f32.mrf.mxu0 }
  0xcf   :  { %v246_v19 = vadd.f32 %v215_v18, %v53_v16 }
  0xd0   :  { %v281_v20 = vld [vmem:[#allocation2 + $0x28] sm:$0xff] }
  0xd1   :  { %263 = vst.msk [vmem:[#allocation2 + $0x30] sm:$0xff] %vm30_vm0, %v246_v19  ;;  %v333_v21 = vmul.f32 %v1076_v17, %v281_v20  ;;  %1038 = vmatmul.msk.f32.gmra.mxu2 %vm30_vm0, %v281_v20  ;;  %1047 = vmatmul.msk.f32.vlgmr.msra.gmra.mxu3 %vm30_vm0, %v290_v1 }
  0xd3   :  { %1022 = vmatmul.msk.f32.gmra.mxu1 %vm30_vm0, %v333_v21 }
  0xd6   :  { %v217_v25 = vpop.f32.mrf.mxu0 }
  0xd7   :  { %v247_v26 = vadd.f32 %v217_v25, %v54_v23 }
  0xd8   :  { %v282_v27 = vld [vmem:[#allocation2 + $0x30] sm:$0xff] }
  0xd9   :  { %264 = vst.msk [vmem:[#allocation2 + $0x38] sm:$0xff] %vm30_vm0, %v247_v26  ;;  %v334_v28 = vmul.f32 %v1079_v24, %v282_v27  ;;  %1039 = vmatmul.msk.f32.gmra.mxu2 %vm30_vm0, %v282_v27  ;;  %1048 = vmatmul.msk.f32.gmra.mxu3 %vm30_vm0, %v291_v11 }
  0xdb   :  { %1023 = vmatmul.msk.f32.gmra.mxu1 %vm30_vm0, %v334_v28 }
  0xde   :  { %v220_v31 = vpop.f32.mrf.mxu0 }
  0xdf   :  { %v248_v32 = vadd.f32 %v220_v31, %v55_v29 }
  0xe0   :  { %v283_v33 = vld [vmem:[#allocation2 + $0x38] sm:$0xff] }
  0xe1   :  { %265 = vst.msk [vmem:[#allocation2 + $0x40] sm:$0xff] %vm30_vm0, %v248_v32  ;;  %v335_v34 = vmul.f32 %v1080_v30, %v283_v33  ;;  %1040 = vmatmul.msk.f32.gmra.mxu2 %vm30_vm0, %v283_v33 }
  0xe3   :  { %1024 = vmatmul.msk.f32.gmra.mxu1 %vm30_vm0, %v335_v34 }
  0xe6   :  { %v222_v38 = vpop.f32.mrf.mxu0 }
  0xe7   :  { %v249_v39 = vadd.f32 %v222_v38, %v56_v36 }
  0xe8   :  { %v284_v40 = vld [vmem:[#allocation2 + $0x40] sm:$0xff] }
  0xe9   :  { %266 = vst.msk [vmem:[#allocation2 + $0x48] sm:$0xff] %vm30_vm0, %v249_v39  ;;  %v336_v41 = vmul.f32 %v1083_v37, %v284_v40  ;;  %1041 = vmatmul.msk.f32.gmra.mxu2 %vm30_vm0, %v284_v40 }
  0xeb   :  { %1025 = vmatmul.msk.f32.gmra.mxu1 %vm30_vm0, %v336_v41 }
  0xee   :  { %v225_v44 = vpop.f32.mrf.mxu0 }
  0xef   :  { %v250_v45 = vadd.f32 %v225_v44, %v57_v42 }
  0xf0   :  { %v285_v46 = vld [vmem:[#allocation2 + $0x48] sm:$0xff] }
  0xf1   :  { %267 = vst.msk [vmem:[#allocation2 + $0x50] sm:$0xff] %vm30_vm0, %v250_v45  ;;  %v337_v47 = vmul.f32 %v1084_v43, %v285_v46  ;;  %1042 = vmatmul.msk.f32.gmra.mxu2 %vm30_vm0, %v285_v46 }
  0xf3   :  { %1026 = vmatmul.msk.f32.gmra.mxu1 %vm30_vm0, %v337_v47 }
  0xf6   :  { %v227_v51 = vpop.f32.mrf.mxu0 }
  0xf7   :  { %v251_v52 = vadd.f32 %v227_v51, %v58_v49 }
  0xf8   :  { %v286_v53 = vld [vmem:[#allocation2 + $0x50] sm:$0xff] }
  0xf9   :  { %268 = vst.msk [vmem:[#allocation2 + $0x58] sm:$0xff] %vm30_vm0, %v251_v52  ;;  %v338_v54 = vmul.f32 %v1087_v50, %v286_v53  ;;  %1043 = vmatmul.msk.f32.gmra.mxu2 %vm30_vm0, %v286_v53 }
  0xfb   :  { %1027 = vmatmul.msk.f32.gmra.mxu1 %vm30_vm0, %v338_v54 }
 0x100   :  { %v287_v56 = vld [vmem:[#allocation2 + $0x58] sm:$0xff] }
 0x101   :  { %v339_v57 = vmul.f32 %v1088_v55, %v287_v56  ;;  %1044 = vmatmul.msk.f32.gmra.mxu2 %vm30_vm0, %v287_v56 }
 0x103   :  { %1028 = vmatmul.msk.f32.gmra.mxu1 %vm30_vm0, %v339_v57 }
 0x109   :  { %1045 = vmatmul.msk.f32.gmra.mxu2 %vm30_vm0, %v288_v60 }
 0x10b   :  { %1029 = vmatmul.msk.f32.gmra.mxu1 %vm30_vm0, %v340_v61 }
 0x111   :  { %1046 = vmatmul.msk.f32.gmra.mxu2 %vm30_vm0, %v289_v63 }
 0x113   :  { %1030 = vmatmul.msk.f32.gmra.mxu1 %vm30_vm0, %v341_v0 }
 0x128   :  { %v413_v1 = vpop.f32.mrf.mxu1 }
 0x12c   :  { %v526_v3 = vpop.f32.mrf.mxu2 }
 0x12d   :  { %v527_v4 = vadd.f32 %v526_v3, %v413_v1 }
 0x12f   :  { %v578_v5 = vadd.f32 %v1390_v2, %v527_v4 }
 0x130   :  { %v416_v6 = vpop.f32.mrf.mxu1 }
 0x131   :  { %v594_v7 = vmul.f32 0.2, %v578_v5 }
 0x133   :  { %v1393_v8 = vmax.f32 %v578_v5, %v594_v7 }
 0x134   :  { %v529_v9 = vpop.f32.mrf.mxu2 }
 0x135   :  { %v626_v10 = vpack.c.bf16 %v1393_v8, %v1393_v8  ;;  %v530_v11 = vadd.f32 %v529_v9, %v416_v6  ;;  %v659_v12 = vmul.f32 %v1393_v8, %v1393_v8 }
 0x137   :  { %643 = vst.msk [vmem:[#allocation3] sm:$0xf] %vm642_vm1, %v626_v10  ;;  %v579_v13 = vadd.f32 %v1390_v2, %v530_v11  ;;  %v675_v14 = vsel %vm30_vm0, %v659_v12, 0.0 }
 0x138   :  { %676 = vadd.xlane.f32.xlu0 %v675_v14  ;;  %v419_v15 = vpop.f32.mrf.mxu1 }
 0x139   :  { %v595_v16 = vmul.f32 0.2, %v579_v13 }
 0x13b   :  { %v1402_v17 = vmax.f32 %v579_v13, %v595_v16 }
 0x13c   :  { %v532_v18 = vpop.f32.mrf.mxu2 }
 0x13d   :  { %v627_v19 = vpack.c.bf16 %v1402_v17, %v1402_v17  ;;  %v533_v20 = vadd.f32 %v532_v18, %v419_v15  ;;  %v660_v21 = vmul.f32 %v1402_v17, %v1402_v17 }
 0x13f   :  { %644 = vst.msk [vmem:[#allocation3 + $0x4] sm:$0xf] %vm642_vm1, %v627_v19  ;;  %v580_v22 = vadd.f32 %v1390_v2, %v533_v20  ;;  %v678_v23 = vsel %vm30_vm0, %v660_v21, 0.0 }
 0x140   :  { %679 = vadd.xlane.f32.xlu0 %v678_v23  ;;  %v422_v24 = vpop.f32.mrf.mxu1 }
 0x141   :  { %v596_v25 = vmul.f32 0.2, %v580_v22 }
 0x143   :  { %v1411_v26 = vmax.f32 %v580_v22, %v596_v25 }
 0x144   :  { %v535_v27 = vpop.f32.mrf.mxu2  ;;  %v455_v28 = vpop.f32.mrf.mxu3 }
 0x145   :  { %v628_v29 = vpack.c.bf16 %v1411_v26, %v1411_v26  ;;  %v536_v30 = vadd.f32 %v535_v27, %v422_v24  ;;  %v661_v31 = vmul.f32 %v1411_v26, %v1411_v26 }
 0x147   :  { %645 = vst.msk [vmem:[#allocation3 + $0x8] sm:$0xf] %vm642_vm1, %v628_v29  ;;  %v581_v32 = vadd.f32 %v1390_v2, %v536_v30  ;;  %v681_v33 = vsel %vm30_vm0, %v661_v31, 0.0 }
 0x148   :  { %682 = vadd.xlane.f32.xlu1 %v681_v33  ;;  %v425_v34 = vpop.f32.mrf.mxu1 }
 0x149   :  { %v597_v35 = vmul.f32 0.2, %v581_v32 }
 0x14b   :  { %v1420_v36 = vmax.f32 %v581_v32, %v597_v35 }
 0x14c   :  { %v538_v37 = vpop.f32.mrf.mxu2  ;;  %v458_v38 = vpop.f32.mrf.mxu3 }
 0x14d   :  { %v629_v39 = vpack.c.bf16 %v1420_v36, %v1420_v36  ;;  %v539_v40 = vadd.f32 %v538_v37, %v425_v34  ;;  %v662_v41 = vmul.f32 %v1420_v36, %v1420_v36 }
 0x14f   :  { %646 = vst.msk [vmem:[#allocation3 + $0xc] sm:$0xf] %vm642_vm1, %v629_v39  ;;  %v582_v42 = vadd.f32 %v1390_v2, %v539_v40  ;;  %v684_v43 = vsel %vm30_vm0, %v662_v41, 0.0 }
 0x150   :  { %685 = vadd.xlane.f32.xlu1 %v684_v43  ;;  %v428_v44 = vpop.f32.mrf.mxu1 }
 0x151   :  { %v598_v45 = vmul.f32 0.2, %v582_v42 }
 0x153   :  { %v1429_v46 = vmax.f32 %v582_v42, %v598_v45 }
 0x154   :  { %v541_v47 = vpop.f32.mrf.mxu2  ;;  %v568_v48 = vpop.f32.mrf.mxu3 }
 0x155   :  { %v630_v49 = vpack.c.bf16 %v1429_v46, %v1429_v46  ;;  %v542_v50 = vadd.f32 %v541_v47, %v428_v44  ;;  %v663_v51 = vmul.f32 %v1429_v46, %v1429_v46  ;;  %v569_v54 = vadd.f32 %v568_v48, %v455_v28 }
 0x157   :  { %647 = vst.msk [vmem:[#allocation3 + $0x10] sm:$0xf] %vm642_vm1, %v630_v49  ;;  %v583_v52 = vadd.f32 %v1390_v2, %v542_v50  ;;  %v687_v53 = vsel %vm30_vm0, %v663_v51, 0.0  ;;  %v592_v57 = vadd.f32 %v1390_v2, %v569_v54 }
 0x158   :  { %688 = vadd.xlane.f32.xlu2 %v687_v53  ;;  %v431_v55 = vpop.f32.mrf.mxu1 }
 0x159   :  { %v599_v56 = vmul.f32 0.2, %v583_v52  ;;  %v608_v59 = vmul.f32 0.2, %v592_v57 }
 0x15b   :  { %v1439_v58 = vmax.f32 %v583_v52, %v599_v56  ;;  %v1445_v1 = vmax.f32 %v592_v57, %v608_v59 }
 0x15c   :  { %v544_v60 = vpop.f32.mrf.mxu2  ;;  %v571_v61 = vpop.f32.mrf.mxu3 }
 0x15d   :  { %v631_v62 = vpack.c.bf16 %v1439_v58, %v1439_v58  ;;  %v545_v63 = vadd.f32 %v544_v60, %v431_v55  ;;  %v664_v0 = vmul.f32 %v1439_v58, %v1439_v58  ;;  %v572_v3 = vadd.f32 %v571_v61, %v458_v38 }
 0x15e   :  { %v640_v6 = vpack.c.bf16 %v1445_v1, %v1445_v1 }
 0x15f   :  { %648 = vst.msk [vmem:[#allocation3 + $0x14] sm:$0xf] %vm642_vm1, %v631_v62  ;;  %v584_v4 = vadd.f32 %v1390_v2, %v545_v63  ;;  %v690_v5 = vsel %vm30_vm0, %v664_v0, 0.0  ;;  %v593_v9 = vadd.f32 %v1390_v2, %v572_v3 }
 0x160   :  { %691 = vadd.xlane.f32.xlu2 %v690_v5  ;;  %v434_v7 = vpop.f32.mrf.mxu1  ;;  %657 = vst.msk [vmem:[#allocation3 + $0x38] sm:$0xf] %vm642_vm1, %v640_v6 }
 0x161   :  { %v600_v10 = vmul.f32 0.2, %v584_v4  ;;  %v609_v11 = vmul.f32 0.2, %v593_v9 }
 0x163   :  { %v1454_v12 = vmax.f32 %v584_v4, %v600_v10  ;;  %v1456_v14 = vmax.f32 %v593_v9, %v609_v11 }
 0x164   :  { %v547_v13 = vpop.f32.mrf.mxu2 }
 0x165   :  { %v632_v15 = vpack.c.bf16 %v1454_v12, %v1454_v12  ;;  %v548_v16 = vadd.f32 %v547_v13, %v434_v7  ;;  %v665_v18 = vmul.f32 %v1454_v12, %v1454_v12  ;;  %v641_v19 = vpack.c.bf16 %v1456_v14, %v1456_v14 }
 0x166   :  { %v673_v13 = vmul.f32 %v1445_v1, %v1445_v1 }
 0x167   :  { %649 = vst.msk [vmem:[#allocation3 + $0x18] sm:$0xf] %vm642_vm1, %v632_v15  ;;  %v585_v20 = vadd.f32 %v1390_v2, %v548_v16  ;;  %v693_v21 = vsel %vm30_vm0, %v665_v18, 0.0 }
 0x168   :  { %694 = vadd.xlane.f32.xlu0 %v693_v21  ;;  %v437_v22 = vpop.f32.mrf.mxu1  ;;  %658 = vst.msk [vmem:[#allocation3 + $0x3c] sm:$0xf] %vm642_vm1, %v641_v19 }
 0x169   :  { %v601_v23 = vmul.f32 0.2, %v585_v20 }
 0x16b   :  { %v1468_v24 = vmax.f32 %v585_v20, %v601_v23 }
 0x16c   :  { %v550_v25 = vpop.f32.mrf.mxu2 }
 0x16d   :  { %v633_v27 = vpack.c.bf16 %v1468_v24, %v1468_v24  ;;  %v551_v28 = vadd.f32 %v550_v25, %v437_v22  ;;  %v666_v29 = vmul.f32 %v1468_v24, %v1468_v24  ;;  %v717_v22 = vsel %vm30_vm0, %v673_v13, 0.0 }
 0x16f   :  { %650 = vst.msk [vmem:[#allocation3 + $0x1c] sm:$0xf] %vm642_vm1, %v633_v27  ;;  %v586_v30 = vadd.f32 %v1390_v2, %v551_v28  ;;  %v696_v31 = vsel %vm30_vm0, %v666_v29, 0.0  ;;  %v674_v28 = vmul.f32 %v1456_v14, %v1456_v14 }
 0x170   :  { %697 = vadd.xlane.f32.xlu1 %v696_v31  ;;  %v440_v32 = vpop.f32.mrf.mxu1 }
 0x171   :  { %v602_v33 = vmul.f32 0.2, %v586_v30 }
 0x173   :  { %v1477_v34 = vmax.f32 %v586_v30, %v602_v33 }
 0x174   :  { %v553_v35 = vpop.f32.mrf.mxu2 }
 0x175   :  { %v634_v37 = vpack.c.bf16 %v1477_v34, %v1477_v34  ;;  %v554_v38 = vadd.f32 %v553_v35, %v440_v32  ;;  %v667_v39 = vmul.f32 %v1477_v34, %v1477_v34 }
 0x177   :  { %651 = vst.msk [vmem:[#allocation3 + $0x20] sm:$0xf] %vm642_vm1, %v634_v37  ;;  %v587_v40 = vadd.f32 %v1390_v2, %v554_v38  ;;  %v699_v41 = vsel %vm30_vm0, %v667_v39, 0.0 }
 0x178   :  { %700 = vadd.xlane.f32.xlu2 %v699_v41  ;;  %v443_v42 = vpop.f32.mrf.mxu1 }
 0x179   :  { %v603_v43 = vmul.f32 0.2, %v587_v40 }
 0x17b   :  { %v1486_v44 = vmax.f32 %v587_v40, %v603_v43 }
 0x17c   :  { %v556_v45 = vpop.f32.mrf.mxu2 }
 0x17d   :  { %v635_v47 = vpack.c.bf16 %v1486_v44, %v1486_v44  ;;  %v557_v48 = vadd.f32 %v556_v45, %v443_v42  ;;  %v668_v49 = vmul.f32 %v1486_v44, %v1486_v44 }
 0x17f   :  { %652 = vst.msk [vmem:[#allocation3 + $0x24] sm:$0xf] %vm642_vm1, %v635_v47  ;;  %v588_v50 = vadd.f32 %v1390_v2, %v557_v48  ;;  %v702_v51 = vsel %vm30_vm0, %v668_v49, 0.0 }
 0x180   :  { %703 = vadd.xlane.f32.xlu0 %v702_v51  ;;  %v446_v52 = vpop.f32.mrf.mxu1 }
 0x181   :  { %v604_v53 = vmul.f32 0.2, %v588_v50 }
 0x183   :  { %v1495_v54 = vmax.f32 %v588_v50, %v604_v53 }
 0x184   :  { %v559_v55 = vpop.f32.mrf.mxu2 }
 0x185   :  { %v636_v56 = vpack.c.bf16 %v1495_v54, %v1495_v54  ;;  %v560_v57 = vadd.f32 %v559_v55, %v446_v52  ;;  %v669_v59 = vmul.f32 %v1495_v54, %v1495_v54 }
 0x187   :  { %653 = vst.msk [vmem:[#allocation3 + $0x28] sm:$0xf] %vm642_vm1, %v636_v56  ;;  %v589_v60 = vadd.f32 %v1390_v2, %v560_v57  ;;  %v705_v61 = vsel %vm30_vm0, %v669_v59, 0.0 }
 0x188   :  { %706 = vadd.xlane.f32.xlu1 %v705_v61  ;;  %v449_v63 = vpop.f32.mrf.mxu1 }
 0x189   :  { %v605_v62 = vmul.f32 0.2, %v589_v60 }
 0x18b   :  { %v1504_v0 = vmax.f32 %v589_v60, %v605_v62 }
 0x18c   :  { %v562_v3 = vpop.f32.mrf.mxu2 }
 0x18d   :  { %v637_v4 = vpack.c.bf16 %v1504_v0, %v1504_v0  ;;  %v563_v5 = vadd.f32 %v562_v3, %v449_v63  ;;  %v670_v6 = vmul.f32 %v1504_v0, %v1504_v0 }
 0x18f   :  { %654 = vst.msk [vmem:[#allocation3 + $0x2c] sm:$0xf] %vm642_vm1, %v637_v4  ;;  %v590_v7 = vadd.f32 %v1390_v2, %v563_v5  ;;  %v708_v9 = vsel %vm30_vm0, %v670_v6, 0.0 }
 0x190   :  { %709 = vadd.xlane.f32.xlu2 %v708_v9  ;;  %v452_v15 = vpop.f32.mrf.mxu1 }
 0x191   :  { %v606_v10 = vmul.f32 0.2, %v590_v7 }
 0x193   :  { %v1513_v11 = vmax.f32 %v590_v7, %v606_v10 }
 0x194   :  { %v565_v16 = vpop.f32.mrf.mxu2 }
 0x195   :  { %v638_v18 = vpack.c.bf16 %v1513_v11, %v1513_v11  ;;  %v566_v19 = vadd.f32 %v565_v16, %v452_v15  ;;  %v671_v20 = vmul.f32 %v1513_v11, %v1513_v11 }
 0x197   :  { %655 = vst.msk [vmem:[#allocation3 + $0x30] sm:$0xf] %vm642_vm1, %v638_v18  ;;  %v591_v21 = vadd.f32 %v1390_v2, %v566_v19  ;;  %v711_v23 = vsel %vm30_vm0, %v671_v20, 0.0  ;;  %v720_v2 = vsel %vm30_vm0, %v674_v28, 0.0 }
 0x198   :  { %718 = vadd.xlane.f32.xlu2 %v717_v22  ;;  %712 = vadd.xlane.f32.xlu0 %v711_v23 }
 0x199   :  { %v607_v25 = vmul.f32 0.2, %v591_v21 }
 0x19b   :  { %v1525_v27 = vmax.f32 %v591_v21, %v607_v25 }
 0x19d   :  { %v639_v29 = vpack.c.bf16 %v1525_v27, %v1525_v27  ;;  %v672_v30 = vmul.f32 %v1525_v27, %v1525_v27 }
 0x19f   :  { %656 = vst.msk [vmem:[#allocation3 + $0x34] sm:$0xf] %vm642_vm1, %v639_v29  ;;  %v714_v31 = vsel %vm30_vm0, %v672_v30, 0.0 }
 0x1a0   :  { %721 = vadd.xlane.f32.xlu0 %v720_v2  ;;  %715 = vadd.xlane.f32.xlu1 %v714_v31  ;;  %943 = dma.vmem_to_hbm [thread:$0]  %s936_s5, 1024, %s938_s17, [#allocation4], %s1185_s18, %s1185_s18, %s1186_s19  }
 0x1ab   :  { %v677_v32 = vpop.xlane.xlu0 %676 }
 0x1ac   :  { %v723_v33 = vmax.f32 %v677_v32, 1e-24 }
 0x1ae   :  { %1125 = vrsqrt.f32 %v723_v33  ;;  %vm745_vm3 = vweird.f32 %v723_v33 }
 0x1b3   :  { %v680_v35 = vpop.xlane.xlu0 %679 }
 0x1b4   :  { %v1126_v37 = vpop.eup %1125  ;;  %v724_v38 = vmax.f32 %v680_v35, 1e-24 }
 0x1b5   :  { %v740_v39 = vmul.f32 %v1126_v37, %v723_v33  ;;  %vm746_vm2 = vweird.f32 %v1126_v37 }
 0x1b6   :  { %1127 = vrsqrt.f32 %v724_v38  ;;  %vm747_vm4 = vmor %vm745_vm3, %vm746_vm2  ;;  %vm755_vm6 = vweird.f32 %v724_v38 }
 0x1b7   :  { %v741_v40 = vmul.f32 %v1126_v37, %v740_v39 }
 0x1b9   :  { %v742_v41 = vmul.f32 0.5, %v741_v40 }
 0x1bb   :  { %v743_v42 = vsub.f32 1.5, %v742_v41  ;;  %v683_v43 = vpop.xlane.xlu1 %682 }
 0x1bc   :  { %v1128_v45 = vpop.eup %1127  ;;  %v725_v47 = vmax.f32 %v683_v43, 1e-24 }
 0x1bd   :  { %v744_v48 = vmul.f32 %v1126_v37, %v743_v42  ;;  %v750_v49 = vmul.f32 %v1128_v45, %v724_v38  ;;  %vm756_vm5 = vweird.f32 %v1128_v45 }
 0x1be   :  { %1129 = vrsqrt.f32 %v725_v47  ;;  %vm757_vm7 = vmor %vm755_vm6, %vm756_vm5  ;;  %vm765_vm9 = vweird.f32 %v725_v47 }
 0x1bf   :  { %v748_v50 = vsel %vm747_vm4, %v1126_v37, %v744_v48  ;;  %v751_v51 = vmul.f32 %v1128_v45, %v750_v49 }
 0x1c0   :  { %v899_v52 = vmul.f32 %v748_v50, %v1393_v8 }
 0x1c1   :  { %v752_v53 = vmul.f32 0.5, %v751_v51 }
 0x1c2   :  { %915 = vst.msk [vmem:[%s1626_s7] sm:$0xff] %vm30_vm0, %v899_v52 }
 0x1c3   :  { %v753_v55 = vsub.f32 1.5, %v752_v53  ;;  %v686_v56 = vpop.xlane.xlu1 %685 }
 0x1c4   :  { %v1130_v57 = vpop.eup %1129  ;;  %v726_v59 = vmax.f32 %v686_v56, 1e-24 }
 0x1c5   :  { %v754_v60 = vmul.f32 %v1128_v45, %v753_v55  ;;  %v760_v61 = vmul.f32 %v1130_v57, %v725_v47  ;;  %vm766_vm8 = vweird.f32 %v1130_v57 }
 0x1c6   :  { %1131 = vrsqrt.f32 %v726_v59  ;;  %vm767_vm10 = vmor %vm765_vm9, %vm766_vm8  ;;  %vm775_vm12 = vweird.f32 %v726_v59 }
 0x1c7   :  { %v758_v62 = vsel %vm757_vm7, %v1128_v45, %v754_v60  ;;  %v761_v63 = vmul.f32 %v1130_v57, %v760_v61 }
 0x1c8   :  { %v900_v8 = vmul.f32 %v758_v62, %v1402_v17 }
 0x1c9   :  { %v762_v3 = vmul.f32 0.5, %v761_v63 }
 0x1ca   :  { %916 = vst.msk [vmem:[%s1626_s7 + $0x8] sm:$0xff] %vm30_vm0, %v900_v8 }
 0x1cb   :  { %v763_v4 = vsub.f32 1.5, %v762_v3  ;;  %v689_v5 = vpop.xlane.xlu2 %688 }
 0x1cc   :  { %v1132_v6 = vpop.eup %1131  ;;  %v727_v7 = vmax.f32 %v689_v5, 1e-24 }
 0x1cd   :  { %v764_v9 = vmul.f32 %v1130_v57, %v763_v4  ;;  %v770_v10 = vmul.f32 %v1132_v6, %v726_v59  ;;  %vm776_vm11 = vweird.f32 %v1132_v6 }
 0x1ce   :  { %1133 = vrsqrt.f32 %v727_v7  ;;  %vm777_vm13 = vmor %vm775_vm12, %vm776_vm11  ;;  %vm785_vm15 = vweird.f32 %v727_v7 }
 0x1cf   :  { %v768_v13 = vsel %vm767_vm10, %v1130_v57, %v764_v9  ;;  %v771_v15 = vmul.f32 %v1132_v6, %v770_v10 }
 0x1d0   :  { %v901_v17 = vmul.f32 %v768_v13, %v1411_v26 }
 0x1d1   :  { %v772_v16 = vmul.f32 0.5, %v771_v15 }
 0x1d2   :  { %917 = vst.msk [vmem:[%s1626_s7 + $0x10] sm:$0xff] %vm30_vm0, %v901_v17 }
 0x1d3   :  { %v773_v18 = vsub.f32 1.5, %v772_v16  ;;  %v692_v19 = vpop.xlane.xlu2 %691 }
 0x1d4   :  { %v1134_v20 = vpop.eup %1133  ;;  %v728_v21 = vmax.f32 %v692_v19, 1e-24 }
 0x1d5   :  { %v774_v22 = vmul.f32 %v1132_v6, %v773_v18  ;;  %v780_v23 = vmul.f32 %v1134_v20, %v727_v7  ;;  %vm786_vm14 = vweird.f32 %v1134_v20 }
 0x1d6   :  { %1135 = vrsqrt.f32 %v728_v21  ;;  %vm787_vm1 = vmor %vm785_vm15, %vm786_vm14  ;;  %vm795_vm3 = vweird.f32 %v728_v21 }
 0x1d7   :  { %v778_v25 = vsel %vm777_vm13, %v1132_v6, %v774_v22  ;;  %v781_v28 = vmul.f32 %v1134_v20, %v780_v23 }
 0x1d8   :  { %v902_v26 = vmul.f32 %v778_v25, %v1420_v36 }
 0x1d9   :  { %v782_v29 = vmul.f32 0.5, %v781_v28 }
 0x1da   :  { %918 = vst.msk [vmem:[%s1626_s7 + $0x18] sm:$0xff] %vm30_vm0, %v902_v26 }
 0x1db   :  { %v783_v30 = vsub.f32 1.5, %v782_v29  ;;  %v695_v2 = vpop.xlane.xlu0 %694 }
 0x1dc   :  { %v1136_v31 = vpop.eup %1135  ;;  %v729_v32 = vmax.f32 %v695_v2, 1e-24 }
 0x1dd   :  { %v784_v33 = vmul.f32 %v1134_v20, %v783_v30  ;;  %v790_v35 = vmul.f32 %v1136_v31, %v728_v21  ;;  %vm796_vm2 = vweird.f32 %v1136_v31 }
 0x1de   :  { %1137 = vrsqrt.f32 %v729_v32  ;;  %vm797_vm4 = vmor %vm795_vm3, %vm796_vm2  ;;  %vm805_vm6 = vweird.f32 %v729_v32 }
 0x1df   :  { %v788_v37 = vsel %vm787_vm1, %v1134_v20, %v784_v33  ;;  %v791_v38 = vmul.f32 %v1136_v31, %v790_v35 }
 0x1e0   :  { %v903_v36 = vmul.f32 %v788_v37, %v1429_v46 }
 0x1e1   :  { %v792_v39 = vmul.f32 0.5, %v791_v38 }
 0x1e2   :  { %919 = vst.msk [vmem:[%s1626_s7 + $0x20] sm:$0xff] %vm30_vm0, %v903_v36 }
 0x1e3   :  { %v793_v40 = vsub.f32 1.5, %v792_v39  ;;  %v698_v41 = vpop.xlane.xlu1 %697 }
 0x1e4   :  { %v1138_v42 = vpop.eup %1137  ;;  %v730_v43 = vmax.f32 %v698_v41, 1e-24 }
 0x1e5   :  { %v794_v45 = vmul.f32 %v1136_v31, %v793_v40  ;;  %v800_v47 = vmul.f32 %v1138_v42, %v729_v32  ;;  %vm806_vm5 = vweird.f32 %v1138_v42 }
 0x1e6   :  { %1139 = vrsqrt.f32 %v730_v43  ;;  %vm807_vm7 = vmor %vm805_vm6, %vm806_vm5  ;;  %vm815_vm9 = vweird.f32 %v730_v43 }
 0x1e7   :  { %v798_v48 = vsel %vm797_vm4, %v1136_v31, %v794_v45  ;;  %v801_v49 = vmul.f32 %v1138_v42, %v800_v47 }
 0x1e8   :  { %v904_v46 = vmul.f32 %v798_v48, %v1439_v58 }
 0x1e9   :  { %v802_v50 = vmul.f32 0.5, %v801_v49 }
 0x1ea   :  { %920 = vst.msk [vmem:[%s1626_s7 + $0x28] sm:$0xff] %vm30_vm0, %v904_v46 }
 0x1eb   :  { %v803_v51 = vsub.f32 1.5, %v802_v50  ;;  %v701_v52 = vpop.xlane.xlu2 %700 }
 0x1ec   :  { %v1140_v53 = vpop.eup %1139  ;;  %v731_v55 = vmax.f32 %v701_v52, 1e-24 }
 0x1ed   :  { %v804_v56 = vmul.f32 %v1138_v42, %v803_v51  ;;  %v810_v57 = vmul.f32 %v1140_v53, %v730_v43  ;;  %vm816_vm8 = vweird.f32 %v1140_v53 }
 0x1ee   :  { %1141 = vrsqrt.f32 %v731_v55  ;;  %vm817_vm10 = vmor %vm815_vm9, %vm816_vm8  ;;  %vm825_vm12 = vweird.f32 %v731_v55 }
 0x1ef   :  { %v808_v59 = vsel %vm807_vm7, %v1138_v42, %v804_v56  ;;  %v811_v60 = vmul.f32 %v1140_v53, %v810_v57 }
 0x1f0   :  { %v905_v58 = vmul.f32 %v808_v59, %v1454_v12 }
 0x1f1   :  { %v812_v61 = vmul.f32 0.5, %v811_v60 }
 0x1f2   :  { %921 = vst.msk [vmem:[%s1626_s7 + $0x30] sm:$0xff] %vm30_vm0, %v905_v58 }
 0x1f3   :  { %v813_v62 = vsub.f32 1.5, %v812_v61  ;;  %v704_v63 = vpop.xlane.xlu0 %703 }
 0x1f4   :  { %v1142_v8 = vpop.eup %1141  ;;  %v732_v3 = vmax.f32 %v704_v63, 1e-24 }
 0x1f5   :  { %v814_v4 = vmul.f32 %v1140_v53, %v813_v62  ;;  %v820_v5 = vmul.f32 %v1142_v8, %v731_v55  ;;  %vm826_vm11 = vweird.f32 %v1142_v8 }
 0x1f6   :  { %1143 = vrsqrt.f32 %v732_v3  ;;  %vm827_vm13 = vmor %vm825_vm12, %vm826_vm11  ;;  %vm835_vm15 = vweird.f32 %v732_v3 }
 0x1f7   :  { %v818_v6 = vsel %vm817_vm10, %v1140_v53, %v814_v4  ;;  %v821_v7 = vmul.f32 %v1142_v8, %v820_v5 }
 0x1f8   :  { %v906_v12 = vmul.f32 %v818_v6, %v1468_v24 }
 0x1f9   :  { %v822_v9 = vmul.f32 0.5, %v821_v7 }
 0x1fa   :  { %922 = vst.msk [vmem:[%s1626_s7 + $0x38] sm:$0xff] %vm30_vm0, %v906_v12 }
 0x1fb   :  { %v823_v10 = vsub.f32 1.5, %v822_v9  ;;  %v707_v13 = vpop.xlane.xlu1 %706 }
 0x1fc   :  { %v1144_v15 = vpop.eup %1143  ;;  %v733_v17 = vmax.f32 %v707_v13, 1e-24 }
 0x1fd   :  { %v824_v16 = vmul.f32 %v1142_v8, %v823_v10  ;;  %v830_v18 = vmul.f32 %v1144_v15, %v732_v3  ;;  %vm836_vm14 = vweird.f32 %v1144_v15 }
 0x1fe   :  { %1145 = vrsqrt.f32 %v733_v17  ;;  %vm837_vm1 = vmor %vm835_vm15, %vm836_vm14  ;;  %vm845_vm3 = vweird.f32 %v733_v17 }
 0x1ff   :  { %v828_v19 = vsel %vm827_vm13, %v1142_v8, %v824_v16  ;;  %v831_v20 = vmul.f32 %v1144_v15, %v830_v18 }
 0x200   :  { %v907_v24 = vmul.f32 %v828_v19, %v1477_v34 }
 0x201   :  { %v832_v21 = vmul.f32 0.5, %v831_v20 }
 0x202   :  { %923 = vst.msk [vmem:[%s1626_s7 + $0x40] sm:$0xff] %vm30_vm0, %v907_v24 }
 0x203   :  { %v833_v22 = vsub.f32 1.5, %v832_v21  ;;  %v710_v23 = vpop.xlane.xlu2 %709 }
 0x204   :  { %v1146_v25 = vpop.eup %1145  ;;  %v734_v28 = vmax.f32 %v710_v23, 1e-24 }
 0x205   :  { %v834_v26 = vmul.f32 %v1144_v15, %v833_v22  ;;  %v840_v29 = vmul.f32 %v1146_v25, %v733_v17  ;;  %vm846_vm2 = vweird.f32 %v1146_v25 }
 0x206   :  { %1147 = vrsqrt.f32 %v734_v28  ;;  %vm847_vm4 = vmor %vm845_vm3, %vm846_vm2  ;;  %vm855_vm6 = vweird.f32 %v734_v28 }
 0x207   :  { %v838_v30 = vsel %vm837_vm1, %v1144_v15, %v834_v26  ;;  %v841_v2 = vmul.f32 %v1146_v25, %v840_v29 }
 0x208   :  { %v908_v34 = vmul.f32 %v838_v30, %v1486_v44 }
 0x209   :  { %v842_v31 = vmul.f32 0.5, %v841_v2 }
 0x20a   :  { %924 = vst.msk [vmem:[%s1626_s7 + $0x48] sm:$0xff] %vm30_vm0, %v908_v34 }
 0x20b   :  { %v843_v32 = vsub.f32 1.5, %v842_v31  ;;  %v719_v33 = vpop.xlane.xlu2 %718  ;;  %v713_v35 = vpop.xlane.xlu0 %712 }
 0x20c   :  { %v1148_v37 = vpop.eup %1147  ;;  %v737_v38 = vmax.f32 %v719_v33, 1e-24  ;;  %v735_v36 = vmax.f32 %v713_v35, 1e-24 }
 0x20d   :  { %v844_v39 = vmul.f32 %v1146_v25, %v843_v32  ;;  %v850_v40 = vmul.f32 %v1148_v37, %v734_v28  ;;  %vm856_vm5 = vweird.f32 %v1148_v37 }
 0x20e   :  { %1149 = vrsqrt.f32 %v737_v38  ;;  %vm857_vm7 = vmor %vm855_vm6, %vm856_vm5  ;;  %vm885_vm10 = vweird.f32 %v737_v38  ;;  %vm865_vm12 = vweird.f32 %v735_v36 }
 0x20f   :  { %v848_v41 = vsel %vm847_vm4, %v1146_v25, %v844_v39  ;;  %v851_v44 = vmul.f32 %v1148_v37, %v850_v40  ;;  %1151 = vrsqrt.f32 %v735_v36 }
 0x210   :  { %v909_v42 = vmul.f32 %v848_v41, %v1495_v54 }
 0x211   :  { %v852_v43 = vmul.f32 0.5, %v851_v44 }
 0x212   :  { %925 = vst.msk [vmem:[%s1626_s7 + $0x50] sm:$0xff] %vm30_vm0, %v909_v42 }
 0x213   :  { %v853_v45 = vsub.f32 1.5, %v852_v43  ;;  %v722_v47 = vpop.xlane.xlu0 %721  ;;  %v716_v48 = vpop.xlane.xlu1 %715 }
 0x214   :  { %v1150_v49 = vpop.eup %1149  ;;  %v738_v46 = vmax.f32 %v722_v47, 1e-24  ;;  %v736_v50 = vmax.f32 %v716_v48, 1e-24 }
 0x215   :  { %v1152_v51 = vpop.eup %1151  ;;  %v854_v52 = vmul.f32 %v1148_v37, %v853_v45  ;;  %v880_v53 = vmul.f32 %v1150_v49, %v737_v38  ;;  %vm886_vm8 = vweird.f32 %v1150_v49 }
 0x216   :  { %v860_v55 = vmul.f32 %v1152_v51, %v735_v36  ;;  %1153 = vrsqrt.f32 %v738_v46  ;;  %vm866_vm9 = vweird.f32 %v1152_v51  ;;  %vm887_vm11 = vmor %vm885_vm10, %vm886_vm8  ;;  %vm895_vm1 = vweird.f32 %v738_v46 }
 0x217   :  { %v858_v54 = vsel %vm857_vm7, %v1148_v37, %v854_v52  ;;  %v881_v56 = vmul.f32 %v1150_v49, %v880_v53  ;;  %1155 = vrsqrt.f32 %v736_v50  ;;  %vm867_vm13 = vmor %vm865_vm12, %vm866_vm9  ;;  %vm875_vm3 = vweird.f32 %v736_v50 }
 0x218   :  { %v910_v57 = vmul.f32 %v858_v54, %v1504_v0  ;;  %v861_v59 = vmul.f32 %v1152_v51, %v860_v55 }
 0x219   :  { %v882_v60 = vmul.f32 0.5, %v881_v56 }
 0x21a   :  { %926 = vst.msk [vmem:[%s1626_s7 + $0x58] sm:$0xff] %vm30_vm0, %v910_v57  ;;  %v862_v58 = vmul.f32 0.5, %v861_v59 }
 0x21b   :  { %v883_v61 = vsub.f32 1.5, %v882_v60 }
 0x21c   :  { %v1154_v62 = vpop.eup %1153  ;;  %v863_v63 = vsub.f32 1.5, %v862_v58 }
 0x21d   :  { %v1156_v8 = vpop.eup %1155  ;;  %v884_v3 = vmul.f32 %v1150_v49, %v883_v61  ;;  %v890_v4 = vmul.f32 %v1154_v62, %v738_v46  ;;  %vm896_vm14 = vweird.f32 %v1154_v62 }
 0x21e   :  { %v864_v5 = vmul.f32 %v1152_v51, %v863_v63  ;;  %v870_v0 = vmul.f32 %v1156_v8, %v736_v50  ;;  %vm876_vm15 = vweird.f32 %v1156_v8  ;;  %vm897_vm2 = vmor %vm895_vm1, %vm896_vm14 }
 0x21f   :  { %v888_v6 = vsel %vm887_vm11, %v1150_v49, %v884_v3  ;;  %v891_v7 = vmul.f32 %v1154_v62, %v890_v4  ;;  %vm877_vm4 = vmor %vm875_vm3, %vm876_vm15 }
 0x220   :  { %v913_v12 = vmul.f32 %v888_v6, %v1445_v1  ;;  %v868_v9 = vsel %vm867_vm13, %v1152_v51, %v864_v5  ;;  %v871_v10 = vmul.f32 %v1156_v8, %v870_v0 }
 0x221   :  { %v911_v13 = vmul.f32 %v868_v9, %v1513_v11  ;;  %v892_v15 = vmul.f32 0.5, %v891_v7 }
 0x222   :  { %929 = vst.msk [vmem:[%s1626_s7 + $0x70] sm:$0xff] %vm30_vm0, %v913_v12  ;;  %v872_v17 = vmul.f32 0.5, %v871_v10 }
 0x223   :  { %927 = vst.msk [vmem:[%s1626_s7 + $0x60] sm:$0xff] %vm30_vm0, %v911_v13  ;;  %v893_v16 = vsub.f32 1.5, %v892_v15 }
 0x224   :  { %v873_v18 = vsub.f32 1.5, %v872_v17 }
 0x225   :  { %v894_v1 = vmul.f32 %v1154_v62, %v893_v16 }
 0x226   :  { %v874_v11 = vmul.f32 %v1156_v8, %v873_v18 }
 0x227   :  { %v898_v19 = vsel %vm897_vm2, %v1154_v62, %v894_v1 }
 0x228   :  { %v914_v20 = vmul.f32 %v898_v19, %v1456_v14  ;;  %v878_v24 = vsel %vm877_vm4, %v1156_v8, %v874_v11 }
 0x229   :  { %v912_v21 = vmul.f32 %v878_v24, %v1525_v27 }
 0x22a   :  { %930 = vst.msk [vmem:[%s1626_s7 + $0x78] sm:$0xff] %vm30_vm0, %v914_v20 }
 0x22b   :  { %928 = vst.msk [vmem:[%s1626_s7 + $0x68] sm:$0xff] %vm30_vm0, %v912_v21 }
 0x22c   :  { %1181 = dma.done.wait [#allocation4], 1024  }
 0x22d   :  { %1182 = vsyncadd [#allocation4], 4294966272 }
 0x22e   :  { %952 = vsyncpa [#allocation4], 1 }

</bundles_post_ra>
